<compile_context>
chip_gen: v5e
topology: v5e:2x2
jax: 0.10.0
libtpu: 0.0.40
codegen_flags: <defaults>
</compile_context>

<pallas_src>
import jax
import jax.numpy as jnp
from jax.experimental import pallas as pl
from jax.experimental.pallas import tpu as pltpu

NUM_LAYERS = 5


def rnn_model_kernel(x_ref, wih0_ref, b0_ref, wpk_ref, bpk_ref, w1_ref,
                     w2_ref, ob_ref, out_ref):
    # x_ref:    (T*B, D) time-major flattened, row = t*B + b     [VMEM, f32]
    # wih0_ref: (D, H)  layer-0 input weights (transposed)       [VMEM, mxu dtype]
    # b0_ref:   (1, H)  layer-0 bias (b_ih+b_hh)                 [VMEM, f32]
    # wpk_ref:  (H+(L-1)*2H, L*H) block-diagonal packed weights  [VMEM, mxu dtype]
    # bpk_ref:  (1, L*H) packed biases (layer-0 block is zeros)  [VMEM, f32]
    # w1_ref:   (1, H)  fc1 weights                              [VMEM, f32]
    # w2_ref:   (T,)    fc2 weights                              [SMEM, f32]
    # ob_ref:   (1,)    fc1_b*sum(w2)+fc2_b                      [SMEM, f32]
    # out_ref:  (B, 1)                                           [VMEM, f32]
    L = NUM_LAYERS
    H = wih0_ref.shape[1]
    T = w2_ref.shape[0]
    B = out_ref.shape[0]
    mxu_dt = wpk_ref.dtype

    # Bulk layer-0 input projection for the whole sequence, bias folded in.
    # (One matmul; R4: bf16 operands, f32 accumulate.)
    pre0 = (jnp.dot(x_ref[...].astype(mxu_dt), wih0_ref[...],
                    preferred_element_type=jnp.float32)
            + b0_ref[...])                                         # (T*B, H) f32

    # Hidden state / carries live in vregs (f32).
    h_state = [jnp.zeros((B, H), jnp.float32) for _ in range(L)]
    carry = [jnp.zeros((B, H), jnp.float32) for _ in range(L - 1)]
    acc_h = jnp.zeros((B, H), jnp.float32)     # R2: fc2-weighted sum of h_last

    # Wavefront over the (layer, time) grid: cells on one anti-diagonal are
    # independent, so each diagonal is a single packed block-diagonal matmul.
    for diag in range(T + L - 1):
        lo = max(0, diag - (T - 1))            # first active layer
        hi = min(L - 1, diag)                  # last active layer

        if diag == 0:
            # R5: first cell (l=0, t=0) -> hidden state is zero, no matmul.
            h = jnp.tanh(pre0[0:B, :])
            h_state[0] = h
            carry[0] = h
            continue

        # R1: pack the active layers' inputs into one operand.
        #   layer 0 contributes        [h_state[0]]            (H cols of wpk rows)
        #   layer l>=1 contributes     [carry[l-1], h_state[l]] (2H rows each)
        pieces = []
        if lo == 0:
            pieces.append(h_state[0])
        for l in range(max(lo, 1), hi + 1):
            pieces.append(carry[l - 1])
            pieces.append(h_state[l])
        packed = jnp.concatenate(pieces, axis=-1).astype(mxu_dt)  # (B, r1-r0)

        # Static slice of the block-diagonal weight covering the active layers
        # (R3: reloaded from VMEM per diagonal, short live range).
        r0 = 0 if lo == 0 else H + (lo - 1) * 2 * H
        r1 = H + hi * 2 * H
        c0, c1 = lo * H, (hi + 1) * H
        z = jnp.dot(packed, wpk_ref[r0:r1, c0:c1],
                    preferred_element_type=jnp.float32)            # (B, cols) f32
        z = z + bpk_ref[:, c0:c1]              # implicit (1, cols) broadcast

        new_carry = list(carry)
        for l in range(lo, hi + 1):
            t = diag - l
            zl = z[:, (l - lo) * H:(l - lo + 1) * H]
            if l == 0:
                # Layer-0 input projection (+ its bias) was precomputed.
                zl = zl + pre0[t * B:(t + 1) * B, :]
            h = jnp.tanh(zl)
            h_state[l] = h
            if l < L - 1:
                new_carry[l] = h
            else:
                # R2: only the fc2-weighted accumulation stays in the loop.
                acc_h = acc_h + w2_ref[t] * h
        carry = new_carry

    # R2: fc1 applied once; combined bias precomputed at prep time.
    out = jnp.sum(acc_h * w1_ref[...], axis=-1, keepdims=True) + ob_ref[0]
    out_ref[...] = out.astype(out_ref.dtype)


def prepare_params(params, mxu_dtype=jnp.bfloat16):
    """One-time (R9) repacking of PyTorch-layout parameters for the kernel."""
    L = NUM_LAYERS
    H = params["W_hh_0"].shape[0]
    T = params["fc2_w"].shape[1]

    wih0 = params["W_ih_0"].T.astype(mxu_dtype)                          # (D, H)
    b0 = (params["b_ih_0"] + params["b_hh_0"]).reshape(1, H).astype(jnp.float32)

    # Block-diagonal packed recurrent weight:
    #   rows [0:H]                      -> W_hh_0^T            (cols 0:H)
    #   rows [H+(l-1)*2H : H+l*2H]      -> [W_ih_l^T; W_hh_l^T] (cols l*H:(l+1)*H)
    rows = H + (L - 1) * 2 * H
    wpk = jnp.zeros((rows, L * H), jnp.float32)
    wpk = wpk.at[:H, :H].set(params["W_hh_0"].T)
    bpk = jnp.zeros((1, L * H), jnp.float32)   # layer-0 bias lives in pre0
    for l in range(1, L):
        r = H + (l - 1) * 2 * H
        c = l * H
        wpk = wpk.at[r:r + H, c:c + H].set(params[f"W_ih_{l}"].T)
        wpk = wpk.at[r + H:r + 2 * H, c:c + H].set(params[f"W_hh_{l}"].T)
        bpk = bpk.at[0, c:c + H].set(params[f"b_ih_{l}"] + params[f"b_hh_{l}"])

    w1 = params["fc1_w"].astype(jnp.float32)                             # (1, H)
    w2 = params["fc2_w"].reshape(T).astype(jnp.float32)                  # (T,)
    out_bias = (params["fc1_b"][0] * jnp.sum(w2)
                + params["fc2_b"][0]).reshape(1).astype(jnp.float32)     # (1,)

    return {"wih0": wih0, "b0": b0, "wpk": wpk.astype(mxu_dtype), "bpk": bpk,
            "w1": w1, "w2": w2, "out_bias": out_bias}


@jax.jit
def rnn_model_forward(x, packed):
    """x: (B, T, D) f32, packed: prepare_params(...). Returns (B,) f32."""
    B, T, D = x.shape
    H = packed["w1"].shape[1]

    # Pad batch to a full sublane tile (8); padded rows are sliced away.
    Bp = max(8, ((B + 7) // 8) * 8)
    x_p = jnp.zeros((Bp, T, D), jnp.float32).at[:B].set(x)
    # Time-major flatten (row = t*Bp + b) -> layer-0 projection is one matmul
    # and per-timestep slices stay sublane-aligned.
    x_tm = jnp.transpose(x_p, (1, 0, 2)).reshape(T * Bp, D)

    vmem = pl.BlockSpec(memory_space=pltpu.MemorySpace.VMEM)
    smem = pl.BlockSpec(memory_space=pltpu.MemorySpace.SMEM)
    out = pl.pallas_call(
        rnn_model_kernel,
        out_shape=jax.ShapeDtypeStruct((Bp, 1), jnp.float32),
        in_specs=[vmem] * 6 + [smem, smem],
        out_specs=vmem,
    )(x_tm, packed["wih0"], packed["b0"], packed["wpk"], packed["bpk"],
      packed["w1"], packed["w2"], packed["out_bias"])
    return out[:B, 0]


def make_params(key, input_size, hidden_size, sequence_length):
    """Deterministic PyTorch-style uniform(-1/sqrt(H), 1/sqrt(H)) init."""
    H, D, T = hidden_size, input_size, sequence_length
    k = 1.0 / jnp.sqrt(jnp.float32(H))
    params = {}
    for l in range(NUM_LAYERS):
        in_dim = D if l == 0 else H
        key, k1, k2, k3, k4 = jax.random.split(key, 5)
        params[f"W_ih_{l}"] = jax.random.uniform(k1, (H, in_dim), jnp.float32, -k, k)
        params[f"W_hh_{l}"] = jax.random.uniform(k2, (H, H), jnp.float32, -k, k)
        params[f"b_ih_{l}"] = jax.random.uniform(k3, (H,), jnp.float32, -k, k)
        params[f"b_hh_{l}"] = jax.random.uniform(k4, (H,), jnp.float32, -k, k)
    key, k1, k2, k3, k4 = jax.random.split(key, 5)
    params["fc1_w"] = jax.random.uniform(k1, (1, H), jnp.float32, -k, k)
    params["fc1_b"] = jax.random.uniform(k2, (1,), jnp.float32, -k, k)
    kt = 1.0 / jnp.sqrt(jnp.float32(T))
    params["fc2_w"] = jax.random.uniform(k3, (1, T), jnp.float32, -kt, kt)
    params["fc2_b"] = jax.random.uniform(k4, (1,), jnp.float32, -kt, kt)
    return params


def reference_forward(x, params):
    """Pure-JAX reference of the PyTorch forward pass for verification."""
    B, T, D = x.shape
    layer_in = x
    for l in range(NUM_LAYERS):
        Wih = params[f"W_ih_{l}"]
        Whh = params[f"W_hh_{l}"]
        bias = params[f"b_ih_{l}"] + params[f"b_hh_{l}"]
        H = Whh.shape[0]
        h = jnp.zeros((B, H), jnp.float32)
        outs = []
        for t in range(T):
            h = jnp.tanh(layer_in[:, t, :] @ Wih.T + h @ Whh.T + bias)
            outs.append(h)
        layer_in = jnp.stack(outs, axis=1)                       # (B, T, H)
    y = layer_in @ params["fc1_w"].T + params["fc1_b"]           # (B, T, 1)
    y = y[..., 0]                                                # (B, T)
    out = y @ params["fc2_w"].T + params["fc2_b"]                # (B, 1)
    return out[:, 0]                                             # (B,)


if __name__ == "__main__":
    B, T, D, H = 2, 8, 4, 32  # batch, sequence_length, input_size, hidden_size

    key = jax.random.PRNGKey(0)
    key, pkey, xkey = jax.random.split(key, 3)
    params = make_params(pkey, input_size=D, hidden_size=H, sequence_length=T)
    x = jax.random.normal(xkey, (B, T, D), jnp.float32)

    # One-time repacking (R9); default path uses bf16 MXU operands (R4).
    packed = prepare_params(params, mxu_dtype=jnp.bfloat16)
    out = rnn_model_forward(x, packed)
    jax.block_until_ready(out)

    ref = reference_forward(x, params)
    assert out.shape == (B,), out.shape
    # bf16 MXU operands with f32 accumulation -> loose tolerance.  The all-f32
    # variant (prepare_params(..., mxu_dtype=jnp.float32)) matches much tighter.
    assert jnp.allclose(out, ref, atol=2e-2, rtol=2e-2), (out, ref)
    print("KERNEL_OK")
</pallas_src>

<mosaic_0001>
module attributes {stable_mosaic.version = 11 : i64} {
  func.func @rnn_model_kernel(%arg0: memref<64x4xf32, #tpu.memory_space<vmem>>, %arg1: memref<4x32xbf16, #tpu.memory_space<vmem>>, %arg2: memref<1x32xf32, #tpu.memory_space<vmem>>, %arg3: memref<288x160xbf16, #tpu.memory_space<vmem>>, %arg4: memref<1x160xf32, #tpu.memory_space<vmem>>, %arg5: memref<1x32xf32, #tpu.memory_space<vmem>>, %arg6: memref<8xf32, #tpu.memory_space<smem>>, %arg7: memref<1xf32, #tpu.memory_space<smem>>, %arg8: memref<8x1xf32, #tpu.memory_space<vmem>>) attributes {dimension_semantics = [], scalar_prefetch = 0 : i64, scratch_operands = 0 : i64, tpu.core_type = #tpu.core_type<tc>} {
    %c0 = arith.constant 0 : index
    %c0_0 = arith.constant 0 : index
    %0 = vector.load %arg0[%c0, %c0_0] : memref<64x4xf32, #tpu.memory_space<vmem>>, vector<64x4xf32>
    %1 = arith.truncf %0 : vector<64x4xf32> to vector<64x4xbf16>
    %c0_1 = arith.constant 0 : index
    %c0_2 = arith.constant 0 : index
    %2 = vector.load %arg1[%c0_1, %c0_2] : memref<4x32xbf16, #tpu.memory_space<vmem>>, vector<4x32xbf16>
    %cst = arith.constant dense<0.000000e+00> : vector<64x32xf32>
    %3 = tpu.matmul %1, %2, %cst {dimension_numbers = #tpu.dot_dimension_numbers<[1], [0], [0], [1], [0, 0, 1, 1], [], []>} : vector<64x4xbf16>, vector<4x32xbf16>, vector<64x32xf32> -> vector<64x32xf32>
    %c0_3 = arith.constant 0 : index
    %c0_4 = arith.constant 0 : index
    %4 = vector.load %arg2[%c0_3, %c0_4] : memref<1x32xf32, #tpu.memory_space<vmem>>, vector<1x32xf32>
    %5 = vector.broadcast %4 : vector<1x32xf32> to vector<64x32xf32>
    %6 = arith.addf %3, %5 : vector<64x32xf32>
    %cst_5 = arith.constant 0.000000e+00 : f32
    %7 = vector.broadcast %cst_5 : f32 to vector<8x32xf32>
    %cst_6 = arith.constant 0.000000e+00 : f32
    %8 = vector.broadcast %cst_6 : f32 to vector<8x32xf32>
    %cst_7 = arith.constant 0.000000e+00 : f32
    %9 = vector.broadcast %cst_7 : f32 to vector<8x32xf32>
    %cst_8 = arith.constant 0.000000e+00 : f32
    %10 = vector.broadcast %cst_8 : f32 to vector<8x32xf32>
    %cst_9 = arith.constant 0.000000e+00 : f32
    %11 = vector.broadcast %cst_9 : f32 to vector<8x32xf32>
    %12 = vector.extract_strided_slice %6 {offsets = [0, 0], sizes = [8, 32], strides = [1, 1]} : vector<64x32xf32> to vector<8x32xf32>
    %13 = math.tanh %12 : vector<8x32xf32>
    %14 = tpu.concatenate %13, %13, %7 in 1 : vector<8x32xf32>, vector<8x32xf32>, vector<8x32xf32> -> vector<8x96xf32>
    %15 = arith.truncf %14 : vector<8x96xf32> to vector<8x96xbf16>
    %c0_10 = arith.constant 0 : index
    %c0_11 = arith.constant 0 : index
    %16 = vector.load %arg3[%c0_10, %c0_11] : memref<288x160xbf16, #tpu.memory_space<vmem>>, vector<96x64xbf16>
    %cst_12 = arith.constant dense<0.000000e+00> : vector<8x64xf32>
    %17 = tpu.matmul %15, %16, %cst_12 {dimension_numbers = #tpu.dot_dimension_numbers<[1], [0], [0], [1], [0, 0, 1, 1], [], []>} : vector<8x96xbf16>, vector<96x64xbf16>, vector<8x64xf32> -> vector<8x64xf32>
    %c0_13 = arith.constant 0 : index
    %c0_14 = arith.constant 0 : index
    %18 = vector.load %arg4[%c0_13, %c0_14] : memref<1x160xf32, #tpu.memory_space<vmem>>, vector<1x64xf32>
    %19 = vector.broadcast %18 : vector<1x64xf32> to vector<8x64xf32>
    %20 = arith.addf %17, %19 : vector<8x64xf32>
    %21 = vector.extract_strided_slice %20 {offsets = [0, 0], sizes = [8, 32], strides = [1, 1]} : vector<8x64xf32> to vector<8x32xf32>
    %22 = vector.extract_strided_slice %6 {offsets = [8, 0], sizes = [8, 32], strides = [1, 1]} : vector<64x32xf32> to vector<8x32xf32>
    %23 = arith.addf %21, %22 : vector<8x32xf32>
    %24 = math.tanh %23 : vector<8x32xf32>
    %25 = vector.extract_strided_slice %20 {offsets = [0, 32], sizes = [8, 32], strides = [1, 1]} : vector<8x64xf32> to vector<8x32xf32>
    %26 = math.tanh %25 : vector<8x32xf32>
    %27 = tpu.concatenate %24, %24, %26, %26, %8 in 1 : vector<8x32xf32>, vector<8x32xf32>, vector<8x32xf32>, vector<8x32xf32>, vector<8x32xf32> -> vector<8x160xf32>
    %28 = arith.truncf %27 : vector<8x160xf32> to vector<8x160xbf16>
    %c0_15 = arith.constant 0 : index
    %c0_16 = arith.constant 0 : index
    %29 = vector.load %arg3[%c0_15, %c0_16] : memref<288x160xbf16, #tpu.memory_space<vmem>>, vector<160x96xbf16>
    %cst_17 = arith.constant dense<0.000000e+00> : vector<8x96xf32>
    %30 = tpu.matmul %28, %29, %cst_17 {dimension_numbers = #tpu.dot_dimension_numbers<[1], [0], [0], [1], [0, 0, 1, 1], [], []>} : vector<8x160xbf16>, vector<160x96xbf16>, vector<8x96xf32> -> vector<8x96xf32>
    %c0_18 = arith.constant 0 : index
    %c0_19 = arith.constant 0 : index
    %31 = vector.load %arg4[%c0_18, %c0_19] : memref<1x160xf32, #tpu.memory_space<vmem>>, vector<1x96xf32>
    %32 = vector.broadcast %31 : vector<1x96xf32> to vector<8x96xf32>
    %33 = arith.addf %30, %32 : vector<8x96xf32>
    %34 = vector.extract_strided_slice %33 {offsets = [0, 0], sizes = [8, 32], strides = [1, 1]} : vector<8x96xf32> to vector<8x32xf32>
    %35 = vector.extract_strided_slice %6 {offsets = [16, 0], sizes = [8, 32], strides = [1, 1]} : vector<64x32xf32> to vector<8x32xf32>
    %36 = arith.addf %34, %35 : vector<8x32xf32>
    %37 = math.tanh %36 : vector<8x32xf32>
    %38 = vector.extract_strided_slice %33 {offsets = [0, 32], sizes = [8, 32], strides = [1, 1]} : vector<8x96xf32> to vector<8x32xf32>
    %39 = math.tanh %38 : vector<8x32xf32>
    %40 = vector.extract_strided_slice %33 {offsets = [0, 64], sizes = [8, 32], strides = [1, 1]} : vector<8x96xf32> to vector<8x32xf32>
    %41 = math.tanh %40 : vector<8x32xf32>
    %42 = tpu.concatenate %37, %37, %39, %39, %41, %41, %9 in 1 : vector<8x32xf32>, vector<8x32xf32>, vector<8x32xf32>, vector<8x32xf32>, vector<8x32xf32>, vector<8x32xf32>, vector<8x32xf32> -> vector<8x224xf32>
    %43 = arith.truncf %42 : vector<8x224xf32> to vector<8x224xbf16>
    %c0_20 = arith.constant 0 : index
    %c0_21 = arith.constant 0 : index
    %44 = vector.load %arg3[%c0_20, %c0_21] : memref<288x160xbf16, #tpu.memory_space<vmem>>, vector<224x128xbf16>
    %cst_22 = arith.constant dense<0.000000e+00> : vector<8x128xf32>
    %45 = tpu.matmul %43, %44, %cst_22 {dimension_numbers = #tpu.dot_dimension_numbers<[1], [0], [0], [1], [0, 0, 1, 1], [], []>} : vector<8x224xbf16>, vector<224x128xbf16>, vector<8x128xf32> -> vector<8x128xf32>
    %c0_23 = arith.constant 0 : index
    %c0_24 = arith.constant 0 : index
    %46 = vector.load %arg4[%c0_23, %c0_24] : memref<1x160xf32, #tpu.memory_space<vmem>>, vector<1x128xf32>
    %47 = vector.broadcast %46 : vector<1x128xf32> to vector<8x128xf32>
    %48 = arith.addf %45, %47 : vector<8x128xf32>
    %49 = vector.extract_strided_slice %48 {offsets = [0, 0], sizes = [8, 32], strides = [1, 1]} : vector<8x128xf32> to vector<8x32xf32>
    %50 = vector.extract_strided_slice %6 {offsets = [24, 0], sizes = [8, 32], strides = [1, 1]} : vector<64x32xf32> to vector<8x32xf32>
    %51 = arith.addf %49, %50 : vector<8x32xf32>
    %52 = math.tanh %51 : vector<8x32xf32>
    %53 = vector.extract_strided_slice %48 {offsets = [0, 32], sizes = [8, 32], strides = [1, 1]} : vector<8x128xf32> to vector<8x32xf32>
    %54 = math.tanh %53 : vector<8x32xf32>
    %55 = vector.extract_strided_slice %48 {offsets = [0, 64], sizes = [8, 32], strides = [1, 1]} : vector<8x128xf32> to vector<8x32xf32>
    %56 = math.tanh %55 : vector<8x32xf32>
    %57 = vector.extract_strided_slice %48 {offsets = [0, 96], sizes = [8, 32], strides = [1, 1]} : vector<8x128xf32> to vector<8x32xf32>
    %58 = math.tanh %57 : vector<8x32xf32>
    %59 = tpu.concatenate %52, %52, %54, %54, %56, %56, %58, %58, %10 in 1 : vector<8x32xf32>, vector<8x32xf32>, vector<8x32xf32>, vector<8x32xf32>, vector<8x32xf32>, vector<8x32xf32>, vector<8x32xf32>, vector<8x32xf32>, vector<8x32xf32> -> vector<8x288xf32>
    %60 = arith.truncf %59 : vector<8x288xf32> to vector<8x288xbf16>
    %c0_25 = arith.constant 0 : index
    %c0_26 = arith.constant 0 : index
    %61 = vector.load %arg3[%c0_25, %c0_26] : memref<288x160xbf16, #tpu.memory_space<vmem>>, vector<288x160xbf16>
    %cst_27 = arith.constant dense<0.000000e+00> : vector<8x160xf32>
    %62 = tpu.matmul %60, %61, %cst_27 {dimension_numbers = #tpu.dot_dimension_numbers<[1], [0], [0], [1], [0, 0, 1, 1], [], []>} : vector<8x288xbf16>, vector<288x160xbf16>, vector<8x160xf32> -> vector<8x160xf32>
    %c0_28 = arith.constant 0 : index
    %c0_29 = arith.constant 0 : index
    %63 = vector.load %arg4[%c0_28, %c0_29] : memref<1x160xf32, #tpu.memory_space<vmem>>, vector<1x160xf32>
    %64 = vector.broadcast %63 : vector<1x160xf32> to vector<8x160xf32>
    %65 = arith.addf %62, %64 : vector<8x160xf32>
    %66 = vector.extract_strided_slice %65 {offsets = [0, 0], sizes = [8, 32], strides = [1, 1]} : vector<8x160xf32> to vector<8x32xf32>
    %67 = vector.extract_strided_slice %6 {offsets = [32, 0], sizes = [8, 32], strides = [1, 1]} : vector<64x32xf32> to vector<8x32xf32>
    %68 = arith.addf %66, %67 : vector<8x32xf32>
    %69 = math.tanh %68 : vector<8x32xf32>
    %70 = vector.extract_strided_slice %65 {offsets = [0, 32], sizes = [8, 32], strides = [1, 1]} : vector<8x160xf32> to vector<8x32xf32>
    %71 = math.tanh %70 : vector<8x32xf32>
    %72 = vector.extract_strided_slice %65 {offsets = [0, 64], sizes = [8, 32], strides = [1, 1]} : vector<8x160xf32> to vector<8x32xf32>
    %73 = math.tanh %72 : vector<8x32xf32>
    %74 = vector.extract_strided_slice %65 {offsets = [0, 96], sizes = [8, 32], strides = [1, 1]} : vector<8x160xf32> to vector<8x32xf32>
    %75 = math.tanh %74 : vector<8x32xf32>
    %76 = vector.extract_strided_slice %65 {offsets = [0, 128], sizes = [8, 32], strides = [1, 1]} : vector<8x160xf32> to vector<8x32xf32>
    %77 = math.tanh %76 : vector<8x32xf32>
    %c0_30 = arith.constant 0 : index
    %78 = memref.load %arg6[%c0_30] : memref<8xf32, #tpu.memory_space<smem>>
    %79 = vector.broadcast %78 : f32 to vector<8x32xf32>
    %80 = arith.mulf %79, %77 : vector<8x32xf32>
    %81 = arith.addf %11, %80 : vector<8x32xf32>
    %82 = tpu.concatenate %69, %69, %71, %71, %73, %73, %75, %75, %77 in 1 : vector<8x32xf32>, vector<8x32xf32>, vector<8x32xf32>, vector<8x32xf32>, vector<8x32xf32>, vector<8x32xf32>, vector<8x32xf32>, vector<8x32xf32>, vector<8x32xf32> -> vector<8x288xf32>
    %83 = arith.truncf %82 : vector<8x288xf32> to vector<8x288xbf16>
    %c0_31 = arith.constant 0 : index
    %c0_32 = arith.constant 0 : index
    %84 = vector.load %arg3[%c0_31, %c0_32] : memref<288x160xbf16, #tpu.memory_space<vmem>>, vector<288x160xbf16>
    %cst_33 = arith.constant dense<0.000000e+00> : vector<8x160xf32>
    %85 = tpu.matmul %83, %84, %cst_33 {dimension_numbers = #tpu.dot_dimension_numbers<[1], [0], [0], [1], [0, 0, 1, 1], [], []>} : vector<8x288xbf16>, vector<288x160xbf16>, vector<8x160xf32> -> vector<8x160xf32>
    %c0_34 = arith.constant 0 : index
    %c0_35 = arith.constant 0 : index
    %86 = vector.load %arg4[%c0_34, %c0_35] : memref<1x160xf32, #tpu.memory_space<vmem>>, vector<1x160xf32>
    %87 = vector.broadcast %86 : vector<1x160xf32> to vector<8x160xf32>
    %88 = arith.addf %85, %87 : vector<8x160xf32>
    %89 = vector.extract_strided_slice %88 {offsets = [0, 0], sizes = [8, 32], strides = [1, 1]} : vector<8x160xf32> to vector<8x32xf32>
    %90 = vector.extract_strided_slice %6 {offsets = [40, 0], sizes = [8, 32], strides = [1, 1]} : vector<64x32xf32> to vector<8x32xf32>
    %91 = arith.addf %89, %90 : vector<8x32xf32>
    %92 = math.tanh %91 : vector<8x32xf32>
    %93 = vector.extract_strided_slice %88 {offsets = [0, 32], sizes = [8, 32], strides = [1, 1]} : vector<8x160xf32> to vector<8x32xf32>
    %94 = math.tanh %93 : vector<8x32xf32>
    %95 = vector.extract_strided_slice %88 {offsets = [0, 64], sizes = [8, 32], strides = [1, 1]} : vector<8x160xf32> to vector<8x32xf32>
    %96 = math.tanh %95 : vector<8x32xf32>
    %97 = vector.extract_strided_slice %88 {offsets = [0, 96], sizes = [8, 32], strides = [1, 1]} : vector<8x160xf32> to vector<8x32xf32>
    %98 = math.tanh %97 : vector<8x32xf32>
    %99 = vector.extract_strided_slice %88 {offsets = [0, 128], sizes = [8, 32], strides = [1, 1]} : vector<8x160xf32> to vector<8x32xf32>
    %100 = math.tanh %99 : vector<8x32xf32>
    %c1 = arith.constant 1 : index
    %101 = memref.load %arg6[%c1] : memref<8xf32, #tpu.memory_space<smem>>
    %102 = vector.broadcast %101 : f32 to vector<8x32xf32>
    %103 = arith.mulf %102, %100 : vector<8x32xf32>
    %104 = arith.addf %81, %103 : vector<8x32xf32>
    %105 = tpu.concatenate %92, %92, %94, %94, %96, %96, %98, %98, %100 in 1 : vector<8x32xf32>, vector<8x32xf32>, vector<8x32xf32>, vector<8x32xf32>, vector<8x32xf32>, vector<8x32xf32>, vector<8x32xf32>, vector<8x32xf32>, vector<8x32xf32> -> vector<8x288xf32>
    %106 = arith.truncf %105 : vector<8x288xf32> to vector<8x288xbf16>
    %c0_36 = arith.constant 0 : index
    %c0_37 = arith.constant 0 : index
    %107 = vector.load %arg3[%c0_36, %c0_37] : memref<288x160xbf16, #tpu.memory_space<vmem>>, vector<288x160xbf16>
    %cst_38 = arith.constant dense<0.000000e+00> : vector<8x160xf32>
    %108 = tpu.matmul %106, %107, %cst_38 {dimension_numbers = #tpu.dot_dimension_numbers<[1], [0], [0], [1], [0, 0, 1, 1], [], []>} : vector<8x288xbf16>, vector<288x160xbf16>, vector<8x160xf32> -> vector<8x160xf32>
    %c0_39 = arith.constant 0 : index
    %c0_40 = arith.constant 0 : index
    %109 = vector.load %arg4[%c0_39, %c0_40] : memref<1x160xf32, #tpu.memory_space<vmem>>, vector<1x160xf32>
    %110 = vector.broadcast %109 : vector<1x160xf32> to vector<8x160xf32>
    %111 = arith.addf %108, %110 : vector<8x160xf32>
    %112 = vector.extract_strided_slice %111 {offsets = [0, 0], sizes = [8, 32], strides = [1, 1]} : vector<8x160xf32> to vector<8x32xf32>
    %113 = vector.extract_strided_slice %6 {offsets = [48, 0], sizes = [8, 32], strides = [1, 1]} : vector<64x32xf32> to vector<8x32xf32>
    %114 = arith.addf %112, %113 : vector<8x32xf32>
    %115 = math.tanh %114 : vector<8x32xf32>
    %116 = vector.extract_strided_slice %111 {offsets = [0, 32], sizes = [8, 32], strides = [1, 1]} : vector<8x160xf32> to vector<8x32xf32>
    %117 = math.tanh %116 : vector<8x32xf32>
    %118 = vector.extract_strided_slice %111 {offsets = [0, 64], sizes = [8, 32], strides = [1, 1]} : vector<8x160xf32> to vector<8x32xf32>
    %119 = math.tanh %118 : vector<8x32xf32>
    %120 = vector.extract_strided_slice %111 {offsets = [0, 96], sizes = [8, 32], strides = [1, 1]} : vector<8x160xf32> to vector<8x32xf32>
    %121 = math.tanh %120 : vector<8x32xf32>
    %122 = vector.extract_strided_slice %111 {offsets = [0, 128], sizes = [8, 32], strides = [1, 1]} : vector<8x160xf32> to vector<8x32xf32>
    %123 = math.tanh %122 : vector<8x32xf32>
    %c2 = arith.constant 2 : index
    %124 = memref.load %arg6[%c2] : memref<8xf32, #tpu.memory_space<smem>>
    %125 = vector.broadcast %124 : f32 to vector<8x32xf32>
    %126 = arith.mulf %125, %123 : vector<8x32xf32>
    %127 = arith.addf %104, %126 : vector<8x32xf32>
    %128 = tpu.concatenate %115, %115, %117, %117, %119, %119, %121, %121, %123 in 1 : vector<8x32xf32>, vector<8x32xf32>, vector<8x32xf32>, vector<8x32xf32>, vector<8x32xf32>, vector<8x32xf32>, vector<8x32xf32>, vector<8x32xf32>, vector<8x32xf32> -> vector<8x288xf32>
    %129 = arith.truncf %128 : vector<8x288xf32> to vector<8x288xbf16>
    %c0_41 = arith.constant 0 : index
    %c0_42 = arith.constant 0 : index
    %130 = vector.load %arg3[%c0_41, %c0_42] : memref<288x160xbf16, #tpu.memory_space<vmem>>, vector<288x160xbf16>
    %cst_43 = arith.constant dense<0.000000e+00> : vector<8x160xf32>
    %131 = tpu.matmul %129, %130, %cst_43 {dimension_numbers = #tpu.dot_dimension_numbers<[1], [0], [0], [1], [0, 0, 1, 1], [], []>} : vector<8x288xbf16>, vector<288x160xbf16>, vector<8x160xf32> -> vector<8x160xf32>
    %c0_44 = arith.constant 0 : index
    %c0_45 = arith.constant 0 : index
    %132 = vector.load %arg4[%c0_44, %c0_45] : memref<1x160xf32, #tpu.memory_space<vmem>>, vector<1x160xf32>
    %133 = vector.broadcast %132 : vector<1x160xf32> to vector<8x160xf32>
    %134 = arith.addf %131, %133 : vector<8x160xf32>
    %135 = vector.extract_strided_slice %134 {offsets = [0, 0], sizes = [8, 32], strides = [1, 1]} : vector<8x160xf32> to vector<8x32xf32>
    %136 = vector.extract_strided_slice %6 {offsets = [56, 0], sizes = [8, 32], strides = [1, 1]} : vector<64x32xf32> to vector<8x32xf32>
    %137 = arith.addf %135, %136 : vector<8x32xf32>
    %138 = math.tanh %137 : vector<8x32xf32>
    %139 = vector.extract_strided_slice %134 {offsets = [0, 32], sizes = [8, 32], strides = [1, 1]} : vector<8x160xf32> to vector<8x32xf32>
    %140 = math.tanh %139 : vector<8x32xf32>
    %141 = vector.extract_strided_slice %134 {offsets = [0, 64], sizes = [8, 32], strides = [1, 1]} : vector<8x160xf32> to vector<8x32xf32>
    %142 = math.tanh %141 : vector<8x32xf32>
    %143 = vector.extract_strided_slice %134 {offsets = [0, 96], sizes = [8, 32], strides = [1, 1]} : vector<8x160xf32> to vector<8x32xf32>
    %144 = math.tanh %143 : vector<8x32xf32>
    %145 = vector.extract_strided_slice %134 {offsets = [0, 128], sizes = [8, 32], strides = [1, 1]} : vector<8x160xf32> to vector<8x32xf32>
    %146 = math.tanh %145 : vector<8x32xf32>
    %c3 = arith.constant 3 : index
    %147 = memref.load %arg6[%c3] : memref<8xf32, #tpu.memory_space<smem>>
    %148 = vector.broadcast %147 : f32 to vector<8x32xf32>
    %149 = arith.mulf %148, %146 : vector<8x32xf32>
    %150 = arith.addf %127, %149 : vector<8x32xf32>
    %151 = tpu.concatenate %138, %140, %140, %142, %142, %144, %144, %146 in 1 : vector<8x32xf32>, vector<8x32xf32>, vector<8x32xf32>, vector<8x32xf32>, vector<8x32xf32>, vector<8x32xf32>, vector<8x32xf32>, vector<8x32xf32> -> vector<8x256xf32>
    %152 = arith.truncf %151 : vector<8x256xf32> to vector<8x256xbf16>
    %c32 = arith.constant 32 : index
    %c32_46 = arith.constant 32 : index
    %153 = vector.load %arg3[%c32, %c32_46] : memref<288x160xbf16, #tpu.memory_space<vmem>>, vector<256x128xbf16>
    %cst_47 = arith.constant dense<0.000000e+00> : vector<8x128xf32>
    %154 = tpu.matmul %152, %153, %cst_47 {dimension_numbers = #tpu.dot_dimension_numbers<[1], [0], [0], [1], [0, 0, 1, 1], [], []>} : vector<8x256xbf16>, vector<256x128xbf16>, vector<8x128xf32> -> vector<8x128xf32>
    %c0_48 = arith.constant 0 : index
    %c32_49 = arith.constant 32 : index
    %155 = vector.load %arg4[%c0_48, %c32_49] : memref<1x160xf32, #tpu.memory_space<vmem>>, vector<1x128xf32>
    %156 = vector.broadcast %155 : vector<1x128xf32> to vector<8x128xf32>
    %157 = arith.addf %154, %156 : vector<8x128xf32>
    %158 = vector.extract_strided_slice %157 {offsets = [0, 0], sizes = [8, 32], strides = [1, 1]} : vector<8x128xf32> to vector<8x32xf32>
    %159 = math.tanh %158 : vector<8x32xf32>
    %160 = vector.extract_strided_slice %157 {offsets = [0, 32], sizes = [8, 32], strides = [1, 1]} : vector<8x128xf32> to vector<8x32xf32>
    %161 = math.tanh %160 : vector<8x32xf32>
    %162 = vector.extract_strided_slice %157 {offsets = [0, 64], sizes = [8, 32], strides = [1, 1]} : vector<8x128xf32> to vector<8x32xf32>
    %163 = math.tanh %162 : vector<8x32xf32>
    %164 = vector.extract_strided_slice %157 {offsets = [0, 96], sizes = [8, 32], strides = [1, 1]} : vector<8x128xf32> to vector<8x32xf32>
    %165 = math.tanh %164 : vector<8x32xf32>
    %c4 = arith.constant 4 : index
    %166 = memref.load %arg6[%c4] : memref<8xf32, #tpu.memory_space<smem>>
    %167 = vector.broadcast %166 : f32 to vector<8x32xf32>
    %168 = arith.mulf %167, %165 : vector<8x32xf32>
    %169 = arith.addf %150, %168 : vector<8x32xf32>
    %170 = tpu.concatenate %159, %161, %161, %163, %163, %165 in 1 : vector<8x32xf32>, vector<8x32xf32>, vector<8x32xf32>, vector<8x32xf32>, vector<8x32xf32>, vector<8x32xf32> -> vector<8x192xf32>
    %171 = arith.truncf %170 : vector<8x192xf32> to vector<8x192xbf16>
    %c96 = arith.constant 96 : index
    %c64 = arith.constant 64 : index
    %172 = vector.load %arg3[%c96, %c64] : memref<288x160xbf16, #tpu.memory_space<vmem>>, vector<192x96xbf16>
    %cst_50 = arith.constant dense<0.000000e+00> : vector<8x96xf32>
    %173 = tpu.matmul %171, %172, %cst_50 {dimension_numbers = #tpu.dot_dimension_numbers<[1], [0], [0], [1], [0, 0, 1, 1], [], []>} : vector<8x192xbf16>, vector<192x96xbf16>, vector<8x96xf32> -> vector<8x96xf32>
    %c0_51 = arith.constant 0 : index
    %c64_52 = arith.constant 64 : index
    %174 = vector.load %arg4[%c0_51, %c64_52] : memref<1x160xf32, #tpu.memory_space<vmem>>, vector<1x96xf32>
    %175 = vector.broadcast %174 : vector<1x96xf32> to vector<8x96xf32>
    %176 = arith.addf %173, %175 : vector<8x96xf32>
    %177 = vector.extract_strided_slice %176 {offsets = [0, 0], sizes = [8, 32], strides = [1, 1]} : vector<8x96xf32> to vector<8x32xf32>
    %178 = math.tanh %177 : vector<8x32xf32>
    %179 = vector.extract_strided_slice %176 {offsets = [0, 32], sizes = [8, 32], strides = [1, 1]} : vector<8x96xf32> to vector<8x32xf32>
    %180 = math.tanh %179 : vector<8x32xf32>
    %181 = vector.extract_strided_slice %176 {offsets = [0, 64], sizes = [8, 32], strides = [1, 1]} : vector<8x96xf32> to vector<8x32xf32>
    %182 = math.tanh %181 : vector<8x32xf32>
    %c5 = arith.constant 5 : index
    %183 = memref.load %arg6[%c5] : memref<8xf32, #tpu.memory_space<smem>>
    %184 = vector.broadcast %183 : f32 to vector<8x32xf32>
    %185 = arith.mulf %184, %182 : vector<8x32xf32>
    %186 = arith.addf %169, %185 : vector<8x32xf32>
    %187 = tpu.concatenate %178, %180, %180, %182 in 1 : vector<8x32xf32>, vector<8x32xf32>, vector<8x32xf32>, vector<8x32xf32> -> vector<8x128xf32>
    %188 = arith.truncf %187 : vector<8x128xf32> to vector<8x128xbf16>
    %c160 = arith.constant 160 : index
    %c96_53 = arith.constant 96 : index
    %189 = vector.load %arg3[%c160, %c96_53] : memref<288x160xbf16, #tpu.memory_space<vmem>>, vector<128x64xbf16>
    %cst_54 = arith.constant dense<0.000000e+00> : vector<8x64xf32>
    %190 = tpu.matmul %188, %189, %cst_54 {dimension_numbers = #tpu.dot_dimension_numbers<[1], [0], [0], [1], [0, 0, 1, 1], [], []>} : vector<8x128xbf16>, vector<128x64xbf16>, vector<8x64xf32> -> vector<8x64xf32>
    %c0_55 = arith.constant 0 : index
    %c96_56 = arith.constant 96 : index
    %191 = vector.load %arg4[%c0_55, %c96_56] : memref<1x160xf32, #tpu.memory_space<vmem>>, vector<1x64xf32>
    %192 = vector.broadcast %191 : vector<1x64xf32> to vector<8x64xf32>
    %193 = arith.addf %190, %192 : vector<8x64xf32>
    %194 = vector.extract_strided_slice %193 {offsets = [0, 0], sizes = [8, 32], strides = [1, 1]} : vector<8x64xf32> to vector<8x32xf32>
    %195 = math.tanh %194 : vector<8x32xf32>
    %196 = vector.extract_strided_slice %193 {offsets = [0, 32], sizes = [8, 32], strides = [1, 1]} : vector<8x64xf32> to vector<8x32xf32>
    %197 = math.tanh %196 : vector<8x32xf32>
    %c6 = arith.constant 6 : index
    %198 = memref.load %arg6[%c6] : memref<8xf32, #tpu.memory_space<smem>>
    %199 = vector.broadcast %198 : f32 to vector<8x32xf32>
    %200 = arith.mulf %199, %197 : vector<8x32xf32>
    %201 = arith.addf %186, %200 : vector<8x32xf32>
    %202 = tpu.concatenate %195, %197 in 1 : vector<8x32xf32>, vector<8x32xf32> -> vector<8x64xf32>
    %203 = arith.truncf %202 : vector<8x64xf32> to vector<8x64xbf16>
    %c224 = arith.constant 224 : index
    %c128 = arith.constant 128 : index
    %204 = vector.load %arg3[%c224, %c128] : memref<288x160xbf16, #tpu.memory_space<vmem>>, vector<64x32xbf16>
    %cst_57 = arith.constant dense<0.000000e+00> : vector<8x32xf32>
    %205 = tpu.matmul %203, %204, %cst_57 {dimension_numbers = #tpu.dot_dimension_numbers<[1], [0], [0], [1], [0, 0, 1, 1], [], []>} : vector<8x64xbf16>, vector<64x32xbf16>, vector<8x32xf32> -> vector<8x32xf32>
    %c0_58 = arith.constant 0 : index
    %c128_59 = arith.constant 128 : index
    %206 = vector.load %arg4[%c0_58, %c128_59] : memref<1x160xf32, #tpu.memory_space<vmem>>, vector<1x32xf32>
    %207 = vector.broadcast %206 : vector<1x32xf32> to vector<8x32xf32>
    %208 = arith.addf %205, %207 : vector<8x32xf32>
    %209 = math.tanh %208 : vector<8x32xf32>
    %c7 = arith.constant 7 : index
    %210 = memref.load %arg6[%c7] : memref<8xf32, #tpu.memory_space<smem>>
    %211 = vector.broadcast %210 : f32 to vector<8x32xf32>
    %212 = arith.mulf %211, %209 : vector<8x32xf32>
    %213 = arith.addf %201, %212 : vector<8x32xf32>
    %c0_60 = arith.constant 0 : index
    %c0_61 = arith.constant 0 : index
    %214 = vector.load %arg5[%c0_60, %c0_61] : memref<1x32xf32, #tpu.memory_space<vmem>>, vector<1x32xf32>
    %215 = vector.broadcast %214 : vector<1x32xf32> to vector<8x32xf32>
    %216 = arith.mulf %213, %215 : vector<8x32xf32>
    %cst_62 = arith.constant dense<0.000000e+00> : vector<8xf32>
    %217 = vector.multi_reduction <add>, %216, %cst_62 [1] : vector<8x32xf32> to vector<8xf32>
    %218 = vector.shape_cast %217 : vector<8xf32> to vector<8x1xf32>
    %c0_63 = arith.constant 0 : index
    %219 = memref.load %arg7[%c0_63] : memref<1xf32, #tpu.memory_space<smem>>
    %220 = vector.broadcast %219 : f32 to vector<8x1xf32>
    %221 = arith.addf %218, %220 : vector<8x1xf32>
    %c0_64 = arith.constant 0 : index
    %c0_65 = arith.constant 0 : index
    %222 = vector.load %arg8[%c0_64, %c0_65] : memref<8x1xf32, #tpu.memory_space<vmem>>, vector<8x1xf32>
    tpu.vector_store %arg8[%c0_64, %c0_65], %221 {strides = array<i32>} : memref<8x1xf32, #tpu.memory_space<vmem>>, vector<8x1xf32>,
    return
  }
}

</mosaic_0001>

<bundles_post_ra>
// kernel: rnn_model_forward.1
= control target key start
LH: loop header
LB: loop body
LE: loop exit
PB: predicated region body
PF: predicated region fallthrough
CT: control target
= control target key end

     0   :  { %14 = vsyncpa [#allocation4], 0  ;;  %s2071_s30 = smov [#allocation3]   ;;  %s3165_s0 = inlined_call_operand.vmem [shape: f32[64,4], index: 0, kind: input, shape index: {}]   ;;  %s3166_s1 = inlined_call_operand.vmem [shape: bf16[4,32], index: 1, kind: input, shape index: {}]   ;;  %s3167_s2 = inlined_call_operand.vmem [shape: f32[1,32], index: 2, kind: input, shape index: {}]   ;;  %s3168_s3 = inlined_call_operand.vmem [shape: bf16[288,160], index: 3, kind: input, shape index: {}]   ;;  %s3169_s4 = inlined_call_operand.vmem [shape: f32[1,160], index: 4, kind: input, shape index: {}]   ;;  %s3170_s5 = inlined_call_operand.vmem [shape: f32[1,32], index: 5, kind: input, shape index: {}]   ;;  %s3171_s6 = inlined_call_operand.vmem [shape: f32[8], index: 6, kind: input, shape index: {}]   ;;  %s3172_s7 = inlined_call_operand.<no memory space> [shape: f32[1], index: 7, kind: input, shape index: {}]   ;;  %s3173_s8 = inlined_call_operand.vmem [shape: f32[8,1], index: 8, kind: output, shape index: {}]  }
   0x1   :  { %s32_s29 = sshll.u32 %s3171_s6, 4  ;;  %s33_s29 = int_to_ptr.vmem [resolvable:$true] %s32_s29 }
   0x2   :  { %35 = dma.vmem_to_smem %s33_s29, 16, %s2071_s30, [#allocation4]  }
   0x3   :  { %2069 = dma.done.wait [#allocation4], 16  }
   0x4   :  { %2070 = vsyncadd [#allocation4], 4294967280 }
   0x5   :  { %42 = sfence }
   0x6   :  { %v56_v0 = vld [vmem:[%s3166_s1] sm:$0x3]  ;;  %vm74_vm0 = vcmask 1041408   ;;  %v45_v2 = vld [vmem:[%s3165_s0 + $0x8] sm:$0xff]  ;;  %vm61_vm1 = vcmask 31744   ;;  %s2072_s13 = smov 32  }
   0x7   :  { %v44_v1 = vld [vmem:[%s3165_s0] sm:$0xff]  ;;  %v76_v3 = vsel %vm74_vm0, %v56_v0, 0  ;;  %v1621_v5 = vld [vmem:[%s3168_s3 + $0x50] sm:$0xf]  ;;  %v1901_v6 = vld [vmem:[%s3168_s3 + $0x54] sm:$0xf0] }
   0x8   :  { %v52_v4 = vpack.c.bf16 %v45_v2, %v44_v1  ;;  %85 = vmatpush.bf16.msra.mxu0 %v76_v3  ;;  %v1617_v7 = vld [vmem:[%s3168_s3 + $0x40] sm:$0xf]  ;;  %v1622_v8 = vor.u32 %v1901_v6, %v1621_v5  ;;  %v1900_v9 = vld [vmem:[%s3168_s3 + $0x44] sm:$0xf0]  ;;  %v1613_v11 = vld [vmem:[%s3168_s3 + $0x30] sm:$0xf] }
   0x9   :  { %v1618_v10 = vor.u32 %v1900_v9, %v1617_v7  ;;  %v1899_v12 = vld [vmem:[%s3168_s3 + $0x34] sm:$0xf0]  ;;  %v1609_v14 = vld [vmem:[%s3168_s3 + $0x20] sm:$0xf]  ;;  %v1898_v15 = vld [vmem:[%s3168_s3 + $0x24] sm:$0xf0] }
   0xa   :  { %175 = vmatpush.bf16.msra.mxu1 %v1622_v8  ;;  %v1614_v13 = vor.u32 %v1899_v12, %v1613_v11  ;;  %v1610_v16 = vor.u32 %v1898_v15, %v1609_v14  ;;  %v1605_v17 = vld [vmem:[%s3168_s3 + $0x10] sm:$0xf]  ;;  %v1897_v18 = vld [vmem:[%s3168_s3 + $0x14] sm:$0xf0]  ;;  %v2167_v20 = vld [vmem:[%s3167_s2] ss:$0 sm:$0xff] }
   0xb   :  { %1595 = vmatmul.msk.bf16.vlgmr.msra.gmra.mxu0 %vm61_vm1, %v52_v4  ;;  %v1606_v19 = vor.u32 %v1897_v18, %v1605_v17  ;;  %v1601_v24 = vld [vmem:[%s3168_s3] sm:$0xf]  ;;  %v1896_v25 = vld [vmem:[%s3168_s3 + $0x4] sm:$0xf0]  ;;  %vm112_vm2 = vcmask 261120   ;;  %vm114_vm3 = vcmask 523264  }
   0xc   :  { %v1602_v26 = vor.u32 %v1896_v25, %v1601_v24  ;;  %vm169_vm4 = vcmask 785408   ;;  %v1654_v31 = vld [vmem:[%s3168_s3 + $0x70] sm:$0xf]  ;;  %v1909_v32 = vld [vmem:[%s3168_s3 + $0x74] sm:$0xf0]  ;;  %s2073_s19 = smov 64  }
   0xd   :  { %v1650_v33 = vld [vmem:[%s3168_s3 + $0x60] sm:$0xf]  ;;  %v1655_v34 = vor.u32 %v1909_v32, %v1654_v31  ;;  %v1908_v35 = vld [vmem:[%s3168_s3 + $0x64] sm:$0xf0]  ;;  %v1662_v37 = vld [vmem:[%s3168_s3 + $0x90] sm:$0xf] }
   0xe   :  { %176 = vmatpush.bf16.msra.mxu1 %v1618_v10  ;;  %v1651_v36 = vor.u32 %v1908_v35, %v1650_v33  ;;  %v1911_v38 = vld [vmem:[%s3168_s3 + $0x94] sm:$0xf0]  ;;  %v1646_v39 = vld [vmem:[%s3168_s3 + $0x50] sm:$0xf]  ;;  %v1642_v43 = vld [vmem:[%s3168_s3 + $0x40] sm:$0xf] }
   0xf   :  { %288 = vmatpush.bf16.msra.mxu2 %v1655_v34  ;;  %v1907_v40 = vld [vmem:[%s3168_s3 + $0x54] sm:$0xf0]  ;;  %v1663_v41 = vor.u32 %v1911_v38, %v1662_v37  ;;  %v1906_v44 = vld [vmem:[%s3168_s3 + $0x44] sm:$0xf0]  ;;  %v1638_v46 = vld [vmem:[%s3168_s3 + $0x30] sm:$0xf] }
  0x10   :  { %v1647_v42 = vor.u32 %v1907_v40, %v1646_v39  ;;  %v1643_v45 = vor.u32 %v1906_v44, %v1642_v43  ;;  %v1905_v47 = vld [vmem:[%s3168_s3 + $0x34] sm:$0xf0]  ;;  %v2219_v48 = vld [vmem:[%s3169_s4] ss:$0 sm:$0xff]  ;;  %v1904_v60 = vld [vmem:[%s3168_s3 + $0x24] sm:$0xf0] }
  0x11   :  { %307 = vmatpush.bf16.msra.mxu3 %v1663_v41  ;;  %v1639_v49 = vor.u32 %v1905_v47, %v1638_v46  ;;  %v1634_v59 = vld [vmem:[%s3168_s3 + $0x20] sm:$0xf]  ;;  %v1910_v63 = vld [vmem:[%s3168_s3 + $0x84] sm:$0xf0]  ;;  %v1630_v1 = vld [vmem:[%s3168_s3 + $0x10] sm:$0xf] }
  0x12   :  { %177 = vmatpush.bf16.msra.mxu1 %v1614_v13  ;;  %v1635_v61 = vor.u32 %v1904_v60, %v1634_v59  ;;  %v1658_v62 = vld [vmem:[%s3168_s3 + $0x80] sm:$0xf]  ;;  %v1903_v2 = vld [vmem:[%s3168_s3 + $0x14] sm:$0xf0]  ;;  %v1902_v5 = vld [vmem:[%s3168_s3 + $0x4] sm:$0xf0] }
  0x13   :  { %289 = vmatpush.bf16.msra.mxu2 %v1651_v36  ;;  %v1659_v0 = vor.u32 %v1910_v63, %v1658_v62  ;;  %v1631_v3 = vor.u32 %v1903_v2, %v1630_v1  ;;  %v1626_v4 = vld [vmem:[%s3168_s3] sm:$0xf]  ;;  %v46_v6 = vld [vmem:[%s3165_s0 + $0x10] sm:$0xff]  ;;  %v2074_v7 = vmov 0.0|0.0   ;;  %v47_v9 = vld [vmem:[%s3165_s0 + $0x18] sm:$0xff]  ;;  %s2075_s30 = smov 96  }
  0x14   :  { %v1627_v8 = vor.u32 %v1902_v5, %v1626_v4  ;;  %v53_v10 = vpack.c.bf16 %v47_v9, %v46_v6  ;;  %v1714_v24 = vld [vmem:[%s3168_s3 + $0xc0] sm:$0xf]  ;;  %v1694_v44 = vld [vmem:[%s3168_s3 + $0x70] sm:$0xf]  ;;  %v1913_v6 = vld [vmem:[%s3168_s3 + $0x14] sm:$0xf0] }
  0x15   :  { %308 = vmatpush.bf16.msra.mxu3 %v1659_v0  ;;  %v1706_v41 = vld [vmem:[%s3168_s3 + $0xa0] sm:$0xf]  ;;  %v1702_v46 = vld [vmem:[%s3168_s3 + $0x90] sm:$0xf]  ;;  %v1915_v0 = vld [vmem:[%s3168_s3 + $0x34] sm:$0xf0] }
  0x16   :  { %178 = vmatpush.bf16.msra.mxu1 %v1610_v16  ;;  %v1682_v60 = vld [vmem:[%s3168_s3 + $0x40] sm:$0xf]  ;;  %v1678_v63 = vld [vmem:[%s3168_s3 + $0x30] sm:$0xf]  ;;  %s808_s1 = sld [smem:[#allocation3]]  ;;  %vm1588_vm5 = vcmask 7168  }
  0x17   :  { %290 = vmatpush.bf16.msra.mxu2 %v1647_v42  ;;  %v1922_v42 = vld [vmem:[%s3168_s3 + $0xa4] sm:$0xf0]  ;;  %v1679_v1 = vor.u32 %v1915_v0, %v1678_v63  ;;  %v1674_v2 = vld [vmem:[%s3168_s3 + $0x20] sm:$0xf]  ;;  %v1670_v5 = vld [vmem:[%s3168_s3 + $0x10] sm:$0xf] }
  0x18   :  { %309 = vmatmul.bf16.vlgmr.msra.gmra.mxu3 %v2074_v7  ;;  %v1707_v43 = vor.u32 %v1922_v42, %v1706_v41  ;;  %v1666_v9 = vld [vmem:[%s3168_s3] sm:$0xf]  ;;  %v1953_v41 = vld [vmem:[%s3168_s3 + $0xd4] sm:$0xf0]  ;;  %v1951_v0 = vld [vmem:[%s3168_s3 + $0xc4] sm:$0xf0] }
  0x19   :  { %v1819_v63 = vld [vmem:[%s3168_s3 + $0xc0] sm:$0xf]  ;;  %s1870_s16 = sld [smem:[#allocation3 + $0x2]] }
  0x1a   :  { %179 = vmatpush.bf16.msra.mxu1 %v1606_v19  ;;  %s1873_s17 = sld [smem:[#allocation3 + $0x3]] }
  0x1b   :  { %291 = vmatpush.bf16.msra.mxu2 %v1643_v45  ;;  %1596 = vmatmul.msk.bf16.gmra.mxu0 %vm61_vm1, %v53_v10  ;;  %v1919_v45 = vld [vmem:[%s3168_s3 + $0x74] sm:$0xf0]  ;;  %v1912_v10 = vld [vmem:[%s3168_s3 + $0x4] sm:$0xf0]  ;;  %s1874_s18 = sld [smem:[#allocation3 + $0x4]] }
  0x1c   :  { %v1695_v47 = vor.u32 %v1919_v45, %v1694_v44  ;;  %v1956_v44 = vld [vmem:[%s3168_s3 + $0xf4] sm:$0xf]  ;;  %v1845_v45 = vld [vmem:[%s3168_s3 + $0xf8] sm:$0xf0]  ;;  %s1876_s20 = sld [smem:[#allocation3 + $0x5]] }
  0x1d   :  { %s1877_s14 = sld [smem:[#allocation3 + $0x6]] }
  0x1e   :  { %180 = vmatpush.bf16.msra.mxu1 %v1602_v26  ;;  %v1924_v26 = vld [vmem:[%s3168_s3 + $0xc4] sm:$0xf0]  ;;  %453 = vmatpush.bf16.msrb.mxu3 %v1695_v47  ;;  %s1895_s15 = sld [smem:[#allocation3 + $0x7]] }
  0x1f   :  { %292 = vmatpush.bf16.msra.mxu2 %v1639_v49  ;;  %v1921_v49 = vld [vmem:[%s3168_s3 + $0x94] sm:$0xf0] }
  0x23   :  { %293 = vmatpush.bf16.msra.mxu2 %v1635_v61  ;;  %v1916_v61 = vld [vmem:[%s3168_s3 + $0x44] sm:$0xf0] }
  0x24   :  { %v1683_v62 = vor.u32 %v1916_v61, %v1682_v60  ;;  %v1779_v60 = vld [vmem:[%s3168_s3 + $0x70] sm:$0xf] }
  0x27   :  { %294 = vmatpush.bf16.msra.mxu2 %v1631_v3  ;;  %v1914_v3 = vld [vmem:[%s3168_s3 + $0x24] sm:$0xf0] }
  0x28   :  { %v1675_v4 = vor.u32 %v1914_v3, %v1674_v2  ;;  %v2452_v2 = vor.u32 %v1951_v0, %v1819_v63  ;;  %v1940_v3 = vld [vmem:[%s3168_s3 + $0x74] sm:$0xf] }
  0x29   :  { %v1944_v0 = vld [vmem:[%s3168_s3 + $0x94] sm:$0xf] }
  0x2b   :  { %295 = vmatpush.bf16.msra.mxu2 %v1627_v8  ;;  %v1671_v8 = vor.u32 %v1913_v6, %v1670_v5  ;;  %v1952_v5 = vld [vmem:[%s3168_s3 + $0xd4] sm:$0xf] }
  0x88   :  { %v87_v21 = vpop.f32.mrf.mxu0 }
  0x89   :  { %v88_v22 = vadd.f32 %v2167_v20, %v87_v21 }
  0x8b   :  { %2010 = vtanh.f32 %v88_v22  ;;  %v1718_v22 = vld [vmem:[%s3168_s3 + $0xd0] sm:$0xf] }
  0x90   :  { %v89_v50 = vpop.f32.mrf.mxu0 }
  0x91   :  { %v2011_v23 = vpop.eup %2010  ;;  %v90_v52 = vadd.f32 %v2167_v20, %v89_v50  ;;  %v1703_v50 = vor.u32 %v1921_v49, %v1702_v46  ;;  %v2407_v46 = vor.u32 %v1956_v44, %v1845_v45 }
  0x92   :  { %109 = vrot.lane.b32.xlu0 %v2011_v23, %s2072_s13 }
  0x98   :  { %v92_v31 = vpop.f32.mrf.mxu0 }
  0x99   :  { %v93_v33 = vadd.f32 %v2167_v20, %v92_v31  ;;  %v1955_v31 = vld [vmem:[%s3168_s3 + $0xe4] sm:$0xf0] }
  0x9b   :  { %v310_v19 = vpop.f32.mrf.mxu3 }
  0xa0   :  { %v94_v49 = vpop.f32.mrf.mxu0 }
  0xa3   :  { %v312_v21 = vpop.f32.mrf.mxu3 }
 0x104   :  { %v110_v27 = vpop.permute.xlu0 %109 }
 0x105   :  { %v113_v28 = vsel %vm112_vm2, %v2011_v23, %v110_v27  ;;  %v1925_v23 = vld [vmem:[%s3168_s3 + $0xd4] sm:$0xf0]  ;;  %v1715_v27 = vor.u32 %v1924_v26, %v1714_v24 }
 0x106   :  { %v115_v29 = vsel %vm114_vm3, %v113_v28, 0.0  ;;  %v1719_v25 = vor.u32 %v1925_v23, %v1718_v22  ;;  %v1710_v28 = vld [vmem:[%s3168_s3 + $0xb0] sm:$0xf] }
 0x107   :  { %v116_v30 = vpack.c.bf16 %v115_v29, %v115_v29  ;;  %v1923_v29 = vld [vmem:[%s3168_s3 + $0xb4] sm:$0xf0] }
 0x108   :  { %468 = vmatpush.bf16.msrb.mxu1 %v1719_v25 }
 0x109   :  { %1623 = vmatmul.msk.bf16.vlgmr.msra.gmra.mxu1 %vm169_vm4, %v116_v30  ;;  %v1711_v30 = vor.u32 %v1923_v29, %v1710_v28  ;;  %v1957_v28 = vld [vmem:[%s3168_s3 + $0xf4] sm:$0xf0]  ;;  %v1835_v29 = vld [vmem:[%s3168_s3 + $0xe0] sm:$0xf] }
 0x10c   :  { %469 = vmatpush.bf16.msrb.mxu1 %v1715_v27  ;;  %v1843_v27 = vld [vmem:[%s3168_s3 + $0xf0] sm:$0xf] }
 0x110   :  { %470 = vmatpush.bf16.msrb.mxu1 %v1711_v30  ;;  %v2364_v30 = vor.u32 %v1957_v28, %v1843_v27  ;;  %v50_v27 = vld [vmem:[%s3165_s0 + $0x30] sm:$0xff]  ;;  %v51_v28 = vld [vmem:[%s3165_s0 + $0x38] sm:$0xff] }
 0x112   :  { %739 = vmatpush.bf16.msrb.mxu0 %v2364_v30 }
 0x114   :  { %471 = vmatpush.bf16.msrb.mxu1 %v1707_v43 }
 0x118   :  { %472 = vmatpush.bf16.msrb.mxu1 %v1703_v50 }
 0x186   :  { %v182_v51 = vpop.f32.mrf.mxu1 }
 0x187   :  { %v183_v53 = vadd.f32 %v2219_v48, %v182_v51  ;;  %v1690_v51 = vld [vmem:[%s3168_s3 + $0x60] sm:$0xf] }
 0x189   :  { %v186_v54 = vadd.f32 %v183_v53, %v90_v52  ;;  %2012 = vtanh.f32 %v183_v53  ;;  %v1918_v52 = vld [vmem:[%s3168_s3 + $0x64] sm:$0xf0] }
 0x18a   :  { %v1691_v53 = vor.u32 %v1918_v52, %v1690_v51  ;;  %v95_v52 = vadd.f32 %v2167_v20, %v94_v49 }
 0x18b   :  { %2014 = vtanh.f32 %v186_v54  ;;  %v1698_v54 = vld [vmem:[%s3168_s3 + $0x80] sm:$0xf] }
 0x18c   :  { %454 = vmatpush.bf16.msrb.mxu3 %v1691_v53 }
 0x18e   :  { %v184_v55 = vpop.f32.mrf.mxu1 }
 0x18f   :  { %v2013_v56 = vpop.eup %2012  ;;  %v1920_v55 = vld [vmem:[%s3168_s3 + $0x84] sm:$0xf0] }
 0x190   :  { %197 = vrot.lane.b32.xlu1 %v2013_v56, %s2073_s19 }
 0x191   :  { %v2015_v57 = vpop.eup %2014 }
 0x192   :  { %v1971_v58 = vpack.i.bf16 %v2013_v56, %v2015_v57  ;;  %v1699_v56 = vor.u32 %v1920_v55, %v1698_v54 }
 0x194   :  { %1972 = vrot.lane.b32.xlu0 %v1971_v58, %s2072_s13  ;;  %473 = vmatpush.bf16.msrb.mxu1 %v1699_v56  ;;  %v1917_v58 = vld [vmem:[%s3168_s3 + $0x54] sm:$0xf0] }
 0x202   :  { %v198_v15 = vpop.permute.xlu1 %197 }
 0x206   :  { %v1973_v11 = vpop.permute.xlu0 %1972 }
 0x207   :  { %v1975_v12 = vunpack.i.h.bf16 %v1973_v11  ;;  %v1974_v13 = vunpack.i.l.bf16 %v1973_v11  ;;  %v1667_v11 = vor.u32 %v1912_v10, %v1666_v9  ;;  %v1771_v9 = vld [vmem:[%s3168_s3 + $0x60] sm:$0xf]  ;;  %v1939_v10 = vld [vmem:[%s3168_s3 + $0x64] sm:$0xf0] }
 0x209   :  { %v200_v14 = vsel %vm112_vm2, %v2015_v57, %v1974_v13  ;;  %v1686_v57 = vld [vmem:[%s3168_s3 + $0x50] sm:$0xf] }
 0x20a   :  { %v201_v16 = vsel %vm114_vm3, %v200_v14, %v1975_v12  ;;  %v1687_v59 = vor.u32 %v1917_v58, %v1686_v57  ;;  %v1954_v58 = vld [vmem:[%s3168_s3 + $0xe4] sm:$0xf] }
 0x20b   :  { %v202_v17 = vsel %vm169_vm4, %v201_v16, %v198_v15 }
 0x20c   :  { %v203_v18 = vpack.c.bf16 %v202_v17, %v202_v17  ;;  %455 = vmatpush.bf16.msrb.mxu3 %v1687_v59  ;;  %v1837_v59 = vld [vmem:[%s3168_s3 + $0xe8] sm:$0xf0] }
 0x20d   :  { %v2439_v61 = vor.u32 %v1954_v58, %v1837_v59  ;;  %v1932_v58 = vld [vmem:[%s3168_s3 + $0x34] sm:$0xf]  ;;  %v1749_v59 = vld [vmem:[%s3168_s3 + $0x38] sm:$0xf0] }
 0x20e   :  { %296 = vmatmul.bf16.vlgmr.msra.gmra.mxu2 %v203_v18 }
 0x210   :  { %456 = vmatpush.bf16.msrb.mxu3 %v1683_v62  ;;  %v1941_v62 = vld [vmem:[%s3168_s3 + $0x74] sm:$0xf0] }
 0x214   :  { %457 = vmatpush.bf16.msrb.mxu3 %v1679_v1  ;;  %v2450_v1 = vor.u32 %v1941_v62, %v1779_v60 }
 0x216   :  { %726 = vmatpush.bf16.msrb.mxu2 %v2450_v1 }
 0x218   :  { %458 = vmatpush.bf16.msrb.mxu3 %v1675_v4  ;;  %v1781_v4 = vld [vmem:[%s3168_s3 + $0x78] sm:$0xf0] }
 0x219   :  { %v2464_v6 = vor.u32 %v1940_v3, %v1781_v4  ;;  %v1797_v3 = vld [vmem:[%s3168_s3 + $0x98] sm:$0xf0]  ;;  %v2608_v4 = vor.u32 %v1932_v58, %v1749_v59 }
 0x21b   :  { %765 = vmatpush.bf16.msra.mxu1 %v2464_v6 }
 0x21c   :  { %459 = vmatpush.bf16.msrb.mxu3 %v1671_v8  ;;  %v1829_v8 = vld [vmem:[%s3168_s3 + $0xd8] sm:$0xf0] }
 0x220   :  { %460 = vmatpush.bf16.msrb.mxu3 %v1667_v11  ;;  %v2477_v11 = vor.u32 %v1952_v5, %v1829_v8  ;;  %v2612_v5 = vor.u32 %v1944_v0, %v1797_v3  ;;  %v1739_v8 = vld [vmem:[%s3168_s3 + $0x20] sm:$0xf] }
 0x291   :  { %v297_v32 = vpop.f32.mrf.mxu2 }
 0x292   :  { %v298_v34 = vadd.f32 %v2219_v48, %v297_v32  ;;  %v1859_v32 = vld [vmem:[%s3168_s3 + $0x110] sm:$0xf] }
 0x294   :  { %v311_v35 = vadd.f32 %v310_v19, %v298_v34 }
 0x296   :  { %v314_v36 = vadd.f32 %v311_v35, %v93_v33  ;;  %2016 = vtanh.f32 %v311_v35  ;;  %v1961_v33 = vld [vmem:[%s3168_s3 + $0x114] sm:$0xf0]  ;;  %v1827_v35 = vld [vmem:[%s3168_s3 + $0xd0] sm:$0xf] }
 0x297   :  { %v2375_v34 = vor.u32 %v1961_v33, %v1859_v32  ;;  %v2411_v47 = vor.u32 %v1953_v41, %v1827_v35  ;;  %v1948_v32 = vld [vmem:[%s3168_s3 + $0xb4] sm:$0xf]  ;;  %v1813_v33 = vld [vmem:[%s3168_s3 + $0xb8] sm:$0xf0]  ;;  %v1803_v41 = vld [vmem:[%s3168_s3 + $0xa0] sm:$0xf] }
 0x298   :  { %2018 = vtanh.f32 %v314_v36  ;;  %v48_v36 = vld [vmem:[%s3165_s0 + $0x20] sm:$0xff]  ;;  %v2558_v44 = vor.u32 %v1948_v32, %v1813_v33  ;;  %v1733_v32 = vld [vmem:[%s3168_s3 + $0x18] sm:$0xf0] }
 0x299   :  { %v299_v37 = vpop.f32.mrf.mxu2  ;;  %758 = vmatpush.bf16.msra.mxu3 %v2375_v34 }
 0x29a   :  { %v2384_v37 = vor.u32 %v1955_v31, %v1835_v29  ;;  %v55_v31 = vpack.c.bf16 %v51_v28, %v50_v27  ;;  %v1929_v27 = vld [vmem:[%s3168_s3 + $0x14] sm:$0xf0]  ;;  %v1928_v28 = vld [vmem:[%s3168_s3 + $0x14] sm:$0xf] }
 0x29b   :  { %v2667_v33 = vor.u32 %v1928_v28, %v1733_v32 }
 0x29c   :  { %v2017_v38 = vpop.eup %2016  ;;  %740 = vmatpush.bf16.msrb.mxu0 %v2384_v37 }
 0x29d   :  { %325 = vrot.lane.b32.xlu2 %v2017_v38, %s2073_s19 }
 0x29e   :  { %v2019_v39 = vpop.eup %2018 }
 0x29f   :  { %v1976_v40 = vpack.i.bf16 %v2017_v38, %v2019_v39 }
 0x2a0   :  { %741 = vmatpush.bf16.msrb.mxu0 %v2411_v47 }
 0x2a1   :  { %1977 = vrot.lane.b32.xlu1 %v1976_v40, %s2072_s13  ;;  %v1959_v40 = vld [vmem:[%s3168_s3 + $0x104] sm:$0xf0] }
 0x2a4   :  { %742 = vmatpush.bf16.msrb.mxu0 %v2452_v2 }
 0x2a5   :  { %328 = vrot.lane.b32.xlu2 %v2017_v38, %s2075_s30  ;;  %v49_v38 = vld [vmem:[%s3165_s0 + $0x28] sm:$0xff] }
 0x2a6   :  { %v54_v42 = vpack.c.bf16 %v49_v38, %v48_v36  ;;  %v1755_v36 = vld [vmem:[%s3168_s3 + $0x40] sm:$0xf]  ;;  %v1935_v38 = vld [vmem:[%s3168_s3 + $0x44] sm:$0xf0] }
 0x2a7   :  { %v2563_v49 = vor.u32 %v1935_v38, %v1755_v36  ;;  %v1723_v36 = vld [vmem:[%s3168_s3] sm:$0xf]  ;;  %v1927_v38 = vld [vmem:[%s3168_s3 + $0x4] sm:$0xf0] }
 0x2a8   :  { %1597 = vmatmul.msk.bf16.gmra.mxu0 %vm61_vm1, %v54_v42  ;;  %v1947_v42 = vld [vmem:[%s3168_s3 + $0xa4] sm:$0xf0] }
 0x2a9   :  { %v2560_v45 = vor.u32 %v1947_v42, %v1803_v41  ;;  %v1725_v41 = vld [vmem:[%s3168_s3 + $0x8] sm:$0xf0] }
 0x2b8   :  { %1598 = vmatmul.msk.bf16.gmra.mxu0 %vm61_vm1, %v55_v31 }
 0x2f7   :  { %v326_v12 = vpop.permute.xlu2 %325 }
 0x2ff   :  { %v329_v13 = vpop.permute.xlu2 %328 }
 0x300   :  { %v334_v14 = vsel %vm112_vm2, %v326_v12, %v329_v13  ;;  %v1938_v13 = vld [vmem:[%s3168_s3 + $0x64] sm:$0xf] }
 0x301   :  { %v335_v15 = vsel %vm114_vm3, %v334_v14, 0.0  ;;  %v1773_v14 = vld [vmem:[%s3168_s3 + $0x68] sm:$0xf0] }
 0x302   :  { %v337_v16 = vpack.c.bf16 %v335_v15, %v335_v15  ;;  %v1950_v15 = vld [vmem:[%s3168_s3 + $0xc4] sm:$0xf] }
 0x304   :  { %1720 = vmatmul.msk.bf16.vlgmr.msrb.gmra.mxu1 %vm169_vm4, %v337_v16  ;;  %v2491_v16 = vor.u32 %v1938_v13, %v1773_v14  ;;  %v1741_v14 = vld [vmem:[%s3168_s3 + $0x28] sm:$0xf0] }
 0x306   :  { %766 = vmatpush.bf16.msra.mxu1 %v2491_v16 }
 0x313   :  { %v1978_v17 = vpop.permute.xlu1 %1977 }
 0x314   :  { %v1980_v18 = vunpack.i.h.bf16 %v1978_v17  ;;  %v1979_v19 = vunpack.i.l.bf16 %v1978_v17  ;;  %v1821_v17 = vld [vmem:[%s3168_s3 + $0xc8] sm:$0xf0] }
 0x316   :  { %v331_v21 = vsel %vm112_vm2, %v2019_v39, %v1979_v19  ;;  %v1851_v39 = vld [vmem:[%s3168_s3 + $0x100] sm:$0xf]  ;;  %v1937_v19 = vld [vmem:[%s3168_s3 + $0x54] sm:$0xf0] }
 0x317   :  { %v332_v22 = vsel %vm114_vm3, %v331_v21, %v1980_v18  ;;  %v2399_v43 = vor.u32 %v1959_v40, %v1851_v39  ;;  %v1763_v18 = vld [vmem:[%s3168_s3 + $0x50] sm:$0xf]  ;;  %v1934_v39 = vld [vmem:[%s3168_s3 + $0x44] sm:$0xf]  ;;  %v1757_v40 = vld [vmem:[%s3168_s3 + $0x48] sm:$0xf0] }
 0x318   :  { %v333_v23 = vsel %vm169_vm4, %v332_v22, %v326_v12  ;;  %v2479_v12 = vor.u32 %v1939_v10, %v1771_v9  ;;  %v1811_v21 = vld [vmem:[%s3168_s3 + $0xb0] sm:$0xf]  ;;  %v1949_v22 = vld [vmem:[%s3168_s3 + $0xb4] sm:$0xf0]  ;;  %v2526_v29 = vor.u32 %v1937_v19, %v1763_v18  ;;  %v1931_v9 = vld [vmem:[%s3168_s3 + $0x24] sm:$0xf0] }
 0x319   :  { %v336_v24 = vpack.c.bf16 %v333_v23, %v333_v23  ;;  %759 = vmatpush.bf16.msra.mxu3 %v2399_v43  ;;  %v1936_v23 = vld [vmem:[%s3168_s3 + $0x54] sm:$0xf]  ;;  %v1930_v10 = vld [vmem:[%s3168_s3 + $0x24] sm:$0xf]  ;;  %v2626_v13 = vor.u32 %v1931_v9, %v1739_v8  ;;  %v1943_v18 = vld [vmem:[%s3168_s3 + $0x84] sm:$0xf0] }
 0x31a   :  { %727 = vmatpush.bf16.msrb.mxu2 %v2479_v12  ;;  %v1942_v19 = vld [vmem:[%s3168_s3 + $0x84] sm:$0xf] }
 0x31b   :  { %461 = vmatmul.bf16.vlgmr.msrb.gmra.mxu3 %v336_v24  ;;  %v2512_v24 = vor.u32 %v1950_v15, %v1821_v17  ;;  %v2631_v15 = vor.u32 %v1930_v10, %v1741_v14  ;;  %v1787_v17 = vld [vmem:[%s3168_s3 + $0x80] sm:$0xf] }
 0x31d   :  { %778 = vmatpush.bf16.msrb.mxu3 %v2407_v46 }
 0x31e   :  { %728 = vmatpush.bf16.msrb.mxu2 %v2526_v29 }
 0x321   :  { %779 = vmatpush.bf16.msrb.mxu3 %v2439_v61 }
 0x322   :  { %729 = vmatpush.bf16.msrb.mxu2 %v2563_v49 }
 0x325   :  { %780 = vmatpush.bf16.msrb.mxu3 %v2477_v11 }
 0x329   :  { %781 = vmatpush.bf16.msrb.mxu3 %v2512_v24 }
 0x32b   :  { %760 = vmatmul.bf16.vlgmr.msra.gmra.mxu3 %v2074_v7 }
 0x32d   :  { %782 = vmatpush.bf16.msrb.mxu3 %v2558_v44 }
 0x381   :  { %v475_v25 = vpop.f32.mrf.mxu1 }
 0x389   :  { %v477_v26 = vpop.f32.mrf.mxu1 }
 0x38a   :  { %v1765_v26 = vld [vmem:[%s3168_s3 + $0x58] sm:$0xf0] }
 0x38b   :  { %v2536_v35 = vor.u32 %v1936_v23, %v1765_v26  ;;  %v1731_v26 = vld [vmem:[%s3168_s3 + $0x10] sm:$0xf] }
 0x38c   :  { %v2661_v31 = vor.u32 %v1929_v27, %v1731_v26  ;;  %v97_v26 = vpop.f32.mrf.mxu0 }
 0x38d   :  { %767 = vmatpush.bf16.msra.mxu1 %v2536_v35 }
 0x394   :  { %v2762_v27 = vpop.f32.mrf.mxu0 }
 0x39c   :  { %v2764_v28 = vpop.f32.mrf.mxu0 }
 0x39e   :  { %v462_v50 = vpop.f32.mrf.mxu3 }
 0x39f   :  { %v463_v51 = vadd.f32 %v2219_v48, %v462_v50  ;;  %v1946_v50 = vld [vmem:[%s3168_s3 + $0xa4] sm:$0xf] }
 0x3a1   :  { %v476_v53 = vadd.f32 %v475_v25, %v463_v51  ;;  %v2514_v25 = vor.u32 %v1949_v22, %v1811_v21  ;;  %v1805_v51 = vld [vmem:[%s3168_s3 + $0xa8] sm:$0xf0]  ;;  %v2643_v21 = vor.u32 %v1943_v18, %v1787_v17 }
 0x3a2   :  { %v2596_v62 = vor.u32 %v1946_v50, %v1805_v51  ;;  %v1789_v22 = vld [vmem:[%s3168_s3 + $0x88] sm:$0xf0]  ;;  %v1960_v50 = vld [vmem:[%s3168_s3 + $0x114] sm:$0xf]  ;;  %v1861_v51 = vld [vmem:[%s3168_s3 + $0x118] sm:$0xf0] }
 0x3a3   :  { %v479_v54 = vadd.f32 %v476_v53, %v95_v52  ;;  %2020 = vtanh.f32 %v476_v53  ;;  %743 = vmatpush.bf16.msrb.mxu0 %v2514_v25  ;;  %v1795_v52 = vld [vmem:[%s3168_s3 + $0x90] sm:$0xf]  ;;  %v2575_v53 = vor.u32 %v1934_v39, %v1757_v40  ;;  %v2649_v23 = vor.u32 %v1942_v19, %v1789_v22  ;;  %v1926_v39 = vld [vmem:[%s3168_s3 + $0x4] sm:$0xf] }
 0x3a4   :  { %783 = vmatpush.bf16.msrb.mxu3 %v2596_v62  ;;  %v2682_v40 = vor.u32 %v1927_v38, %v1723_v36  ;;  %v2687_v42 = vor.u32 %v1926_v39, %v1725_v41  ;;  %v2766_v32 = vpop.f32.mrf.mxu0  ;;  %v540_v41 = vld [vmem:[%s3169_s4] sm:$0x3] }
 0x3a5   :  { %2022 = vtanh.f32 %v479_v54  ;;  %v1747_v54 = vld [vmem:[%s3168_s3 + $0x30] sm:$0xf]  ;;  %768 = vmatpush.bf16.msra.mxu1 %v2575_v53 }
 0x3a6   :  { %v464_v55 = vpop.f32.mrf.mxu3 }
 0x3a7   :  { %744 = vmatpush.bf16.msrb.mxu0 %v2560_v45  ;;  %v1933_v55 = vld [vmem:[%s3168_s3 + $0x34] sm:$0xf0] }
 0x3a8   :  { %v2599_v63 = vor.u32 %v1933_v55, %v1747_v54  ;;  %784 = vmatpush.bf16.msrb.mxu3 %v2612_v5  ;;  %v2704_v54 = vor.u32 %v1960_v50, %v1861_v51  ;;  %v1853_v55 = vld [vmem:[%s3168_s3 + $0x108] sm:$0xf0]  ;;  %v2771_v51 = vperm.slane %v540_v41, 0 }
 0x3a9   :  { %v2419_v56 = vpop.eup %2020  ;;  %769 = vmatpush.bf16.msra.mxu1 %v2608_v4 }
 0x3aa   :  { %493 = vrot.lane.b32.xlu2 %v2419_v56, %s2075_s30  ;;  %490 = vrot.lane.b32.xlu1 %v2419_v56, %s2073_s19 }
 0x3ab   :  { %v2425_v57 = vpop.eup %2022  ;;  %730 = vmatpush.bf16.msrb.mxu2 %v2599_v63 }
 0x3ac   :  { %v1981_v48 = vpack.i.bf16 %v2419_v56, %v2425_v57  ;;  %785 = vmatpush.bf16.msrb.mxu3 %v2649_v23 }
 0x3ad   :  { %770 = vmatpush.bf16.msra.mxu1 %v2631_v15 }
 0x3ae   :  { %1982 = vrot.lane.b32.xlu0 %v1981_v48, %s2072_s13  ;;  %v1945_v48 = vld [vmem:[%s3168_s3 + $0x94] sm:$0xf0] }
 0x3af   :  { %v2593_v60 = vor.u32 %v1945_v48, %v1795_v52  ;;  %731 = vmatpush.bf16.msrb.mxu2 %v2626_v13  ;;  %v1958_v52 = vld [vmem:[%s3168_s3 + $0x104] sm:$0xf] }
 0x3b0   :  { %877 = vmatpush.bf16.msra.mxu3 %v2464_v6  ;;  %v2711_v48 = vor.u32 %v1958_v52, %v1853_v55 }
 0x3b1   :  { %745 = vmatpush.bf16.msrb.mxu0 %v2593_v60  ;;  %771 = vmatpush.bf16.msra.mxu1 %v2667_v33 }
 0x3b3   :  { %732 = vmatpush.bf16.msrb.mxu2 %v2661_v31 }
 0x3b4   :  { %878 = vmatpush.bf16.msra.mxu3 %v2491_v16 }
 0x3b5   :  { %746 = vmatpush.bf16.msrb.mxu0 %v2643_v21  ;;  %772 = vmatpush.bf16.msra.mxu1 %v2687_v42 }
 0x3b7   :  { %733 = vmatpush.bf16.msrb.mxu2 %v2682_v40 }
 0x3b8   :  { %879 = vmatpush.bf16.msra.mxu3 %v2536_v35 }
 0x3b9   :  { %838 = vmatpush.bf16.msra.mxu0 %v2450_v1  ;;  %851 = vmatpush.bf16.msrb.mxu1 %v2364_v30 }
 0x3bb   :  { %797 = vmatpush.bf16.msra.mxu2 %v2704_v54 }
 0x3bc   :  { %880 = vmatpush.bf16.msra.mxu3 %v2575_v53 }
 0x3bd   :  { %839 = vmatpush.bf16.msra.mxu0 %v2479_v12  ;;  %852 = vmatpush.bf16.msrb.mxu1 %v2384_v37 }
 0x3bf   :  { %798 = vmatpush.bf16.msra.mxu2 %v2711_v48 }
 0x3c0   :  { %881 = vmatpush.bf16.msra.mxu3 %v2608_v4 }
 0x3c1   :  { %840 = vmatpush.bf16.msra.mxu0 %v2526_v29  ;;  %853 = vmatpush.bf16.msrb.mxu1 %v2411_v47 }
 0x3c4   :  { %882 = vmatpush.bf16.msra.mxu3 %v2631_v15 }
 0x3c5   :  { %841 = vmatpush.bf16.msra.mxu0 %v2563_v49  ;;  %854 = vmatpush.bf16.msrb.mxu1 %v2452_v2 }
 0x3c8   :  { %883 = vmatpush.bf16.msra.mxu3 %v2667_v33 }
 0x3c9   :  { %842 = vmatpush.bf16.msra.mxu0 %v2599_v63  ;;  %855 = vmatpush.bf16.msrb.mxu1 %v2514_v25 }
 0x3cc   :  { %884 = vmatpush.bf16.msra.mxu3 %v2687_v42 }
 0x3cd   :  { %843 = vmatpush.bf16.msra.mxu0 %v2626_v13  ;;  %856 = vmatpush.bf16.msrb.mxu1 %v2560_v45 }
 0x3d1   :  { %844 = vmatpush.bf16.msra.mxu0 %v2661_v31  ;;  %857 = vmatpush.bf16.msrb.mxu1 %v2593_v60 }
 0x3d5   :  { %845 = vmatpush.bf16.msra.mxu0 %v2682_v40  ;;  %858 = vmatpush.bf16.msrb.mxu1 %v2643_v21 }
 0x404   :  { %v494_v58 = vpop.permute.xlu2 %493 }
 0x41c   :  { %v491_v59 = vpop.permute.xlu1 %490 }
 0x41d   :  { %v499_v0 = vsel %vm112_vm2, %v491_v59, %v494_v58 }
 0x41e   :  { %v500_v3 = vsel %vm114_vm3, %v499_v0, %v494_v58 }
 0x41f   :  { %v501_v8 = vsel %vm169_vm4, %v500_v3, %v2419_v56  ;;  %v98_v3 = vadd.f32 %v2167_v20, %v97_v26 }
 0x420   :  { %v1983_v9 = vpop.permute.xlu0 %1982  ;;  %v503_v10 = vpack.c.bf16 %v501_v8, %v501_v8 }
 0x421   :  { %v1985_v14 = vunpack.i.h.bf16 %v1983_v9  ;;  %v1984_v17 = vunpack.i.l.bf16 %v1983_v9  ;;  %v2775_v9 = vperm.slane %v540_v41, 1 }
 0x422   :  { %747 = vmatmul.bf16.vlgmr.msrb.gmra.mxu0 %v503_v10  ;;  %786 = vmatmul.bf16.vlgmr.msrb.gmra.mxu3 %v503_v10 }
 0x423   :  { %v496_v18 = vsel %vm112_vm2, %v2425_v57, %v1984_v17  ;;  %909 = vmatpush.bf16.msrb.mxu0 %v2704_v54  ;;  %982 = vmatpush.bf16.msrb.mxu3 %v2375_v34  ;;  %v761_v57 = vpop.f32.mrf.mxu3 }
 0x424   :  { %v497_v19 = vsel %vm114_vm3, %v496_v18, %v1985_v14 }
 0x425   :  { %v498_v56 = vsel %vm169_vm4, %v497_v19, %v491_v59 }
 0x426   :  { %v502_v22 = vpack.c.bf16 %v498_v56, %v498_v56 }
 0x427   :  { %910 = vmatpush.bf16.msrb.mxu0 %v2711_v48  ;;  %983 = vmatpush.bf16.msrb.mxu3 %v2399_v43 }
 0x428   :  { %734 = vmatmul.bf16.vlgmr.msrb.gmra.mxu2 %v502_v22  ;;  %773 = vmatmul.bf16.vlgmr.msra.gmra.mxu1 %v502_v22 }
 0x429   :  { %870 = vmatpush.bf16.msrb.mxu2 %v2375_v34  ;;  %950 = vmatpush.bf16.msra.mxu1 %v2450_v1 }
 0x42d   :  { %871 = vmatpush.bf16.msrb.mxu2 %v2399_v43  ;;  %951 = vmatpush.bf16.msra.mxu1 %v2479_v12 }
 0x431   :  { %952 = vmatpush.bf16.msra.mxu1 %v2526_v29 }
 0x435   :  { %953 = vmatpush.bf16.msra.mxu1 %v2563_v49 }
 0x438   :  { %799 = vmatmul.bf16.vlgmr.msra.gmra.mxu2 %v2074_v7  ;;  %v763_v7 = vpop.f32.mrf.mxu3 }
 0x439   :  { %890 = vmatpush.bf16.msra.mxu2 %v2407_v46  ;;  %954 = vmatpush.bf16.msra.mxu1 %v2599_v63 }
 0x43d   :  { %891 = vmatpush.bf16.msra.mxu2 %v2439_v61  ;;  %955 = vmatpush.bf16.msra.mxu1 %v2626_v13 }
 0x441   :  { %892 = vmatpush.bf16.msra.mxu2 %v2477_v11  ;;  %956 = vmatpush.bf16.msra.mxu1 %v2661_v31 }
 0x445   :  { %893 = vmatpush.bf16.msra.mxu2 %v2512_v24  ;;  %957 = vmatpush.bf16.msra.mxu1 %v2682_v40 }
 0x449   :  { %894 = vmatpush.bf16.msra.mxu2 %v2558_v44 }
 0x44d   :  { %895 = vmatpush.bf16.msra.mxu2 %v2596_v62 }
 0x451   :  { %896 = vmatpush.bf16.msra.mxu2 %v2612_v5 }
 0x455   :  { %897 = vmatpush.bf16.msra.mxu2 %v2649_v23 }
 0x49f   :  { %v748_v36 = vpop.f32.mrf.mxu0 }
 0x4a5   :  { %v774_v38 = vpop.f32.mrf.mxu1  ;;  %v787_v39 = vpop.f32.mrf.mxu3 }
 0x4a6   :  { %v775_v17 = vadd.f32 %v774_v38, %v2775_v9 }
 0x4a7   :  { %v750_v50 = vpop.f32.mrf.mxu0 }
 0x4a8   :  { %v788_v56 = vadd.f32 %v787_v39, %v775_v17 }
 0x4ab   :  { %v735_v52 = vpop.f32.mrf.mxu2 }
 0x4ac   :  { %v736_v55 = vadd.f32 %v735_v52, %v2771_v51 }
 0x4ad   :  { %v776_v58 = vpop.f32.mrf.mxu1  ;;  %v789_v59 = vpop.f32.mrf.mxu3 }
 0x4ae   :  { %v749_v0 = vadd.f32 %v748_v36, %v736_v55 }
 0x4b0   :  { %v762_v8 = vadd.f32 %v761_v57, %v749_v0 }
 0x4b2   :  { %v804_v10 = vadd.f32 %v762_v8, %v98_v3  ;;  %2024 = vtanh.f32 %v762_v8 }
 0x4b3   :  { %v737_v14 = vpop.f32.mrf.mxu2 }
 0x4b4   :  { %2026 = vtanh.f32 %v804_v10 }
 0x4b8   :  { %v2025_v18 = vpop.eup %2024 }
 0x4b9   :  { %823 = vrot.lane.b32.xlu2 %v2025_v18, %s2075_s30  ;;  %820 = vrot.lane.b32.xlu1 %v2025_v18, %s2073_s19 }
 0x4ba   :  { %v2027_v19 = vpop.eup %2026 }
 0x4bb   :  { %v800_v22 = vpop.f32.mrf.mxu2  ;;  %v1986_v7 = vpack.i.bf16 %v2025_v18, %v2027_v19 }
 0x4bc   :  { %v801_v36 = vadd.f32 %v800_v22, %v788_v56 }
 0x4bd   :  { %1987 = vrot.lane.b32.xlu0 %v1986_v7, %s2072_s13 }
 0x4be   :  { %2028 = vtanh.f32 %v801_v36 }
 0x4c3   :  { %v802_v20 = vpop.f32.mrf.mxu2 }
 0x4c4   :  { %v2781_v57 = vpop.eup %2028 }
 0x4c5   :  { %v834_v26 = vpack.c.bf16 %v2781_v57, %v2781_v57 }
 0x4c7   :  { %1865 = vmatmul.msk.bf16.vlgmr.msrb.gmra.mxu2 %vm112_vm2, %v834_v26 }
 0x4c8   :  { %989 = vmatpush.bf16.msrb.mxu2 %v2464_v6 }
 0x4cc   :  { %990 = vmatpush.bf16.msrb.mxu2 %v2491_v16 }
 0x4d0   :  { %991 = vmatpush.bf16.msrb.mxu2 %v2536_v35 }
 0x4d4   :  { %992 = vmatpush.bf16.msrb.mxu2 %v2575_v53 }
 0x4d8   :  { %993 = vmatpush.bf16.msrb.mxu2 %v2608_v4 }
 0x4dc   :  { %994 = vmatpush.bf16.msrb.mxu2 %v2631_v15 }
 0x4e0   :  { %995 = vmatpush.bf16.msrb.mxu2 %v2667_v33 }
 0x4e4   :  { %996 = vmatpush.bf16.msrb.mxu2 %v2687_v42 }
 0x513   :  { %v824_v38 = vpop.permute.xlu2 %823 }
 0x52b   :  { %v821_v39 = vpop.permute.xlu1 %820 }
 0x52c   :  { %v829_v41 = vsel %vm112_vm2, %v821_v39, %v824_v38 }
 0x52d   :  { %v830_v50 = vsel %vm114_vm3, %v829_v41, %v824_v38 }
 0x52e   :  { %v831_v52 = vsel %vm169_vm4, %v830_v50, %v2025_v18 }
 0x52f   :  { %v833_v55 = vpack.c.bf16 %v831_v52, %v831_v52  ;;  %v1988_v58 = vpop.permute.xlu0 %1987 }
 0x530   :  { %v1990_v59 = vunpack.i.h.bf16 %v1988_v58  ;;  %v1989_v0 = vunpack.i.l.bf16 %v1988_v58 }
 0x531   :  { %859 = vmatmul.bf16.vlgmr.msrb.gmra.mxu1 %v833_v55  ;;  %898 = vmatmul.bf16.vlgmr.msra.gmra.mxu2 %v833_v55 }
 0x532   :  { %v826_v3 = vsel %vm112_vm2, %v2027_v19, %v1989_v0  ;;  %1094 = vmatpush.bf16.msra.mxu2 %v2375_v34  ;;  %1075 = vmatpush.bf16.msrb.mxu1 %v2364_v30 }
 0x533   :  { %v827_v8 = vsel %vm114_vm3, %v826_v3, %v1990_v59 }
 0x534   :  { %v828_v10 = vsel %vm169_vm4, %v827_v8, %v821_v39 }
 0x535   :  { %v832_v14 = vpack.c.bf16 %v828_v10, %v828_v10 }
 0x536   :  { %1095 = vmatpush.bf16.msra.mxu2 %v2399_v43  ;;  %1076 = vmatpush.bf16.msrb.mxu1 %v2384_v37 }
 0x537   :  { %846 = vmatmul.bf16.vlgmr.msra.gmra.mxu0 %v832_v14  ;;  %885 = vmatmul.bf16.vlgmr.msra.gmra.mxu3 %v832_v14 }
 0x538   :  { %963 = vmatpush.bf16.msra.mxu0 %v2364_v30  ;;  %1002 = vmatpush.bf16.msra.mxu3 %v2407_v46 }
 0x53a   :  { %1077 = vmatpush.bf16.msrb.mxu1 %v2411_v47 }
 0x53c   :  { %964 = vmatpush.bf16.msra.mxu0 %v2384_v37  ;;  %1003 = vmatpush.bf16.msra.mxu3 %v2439_v61 }
 0x53e   :  { %1078 = vmatpush.bf16.msrb.mxu1 %v2452_v2 }
 0x540   :  { %965 = vmatpush.bf16.msra.mxu0 %v2411_v47  ;;  %1004 = vmatpush.bf16.msra.mxu3 %v2477_v11 }
 0x542   :  { %1079 = vmatpush.bf16.msrb.mxu1 %v2514_v25 }
 0x544   :  { %966 = vmatpush.bf16.msra.mxu0 %v2452_v2  ;;  %1005 = vmatpush.bf16.msra.mxu3 %v2512_v24 }
 0x546   :  { %1080 = vmatpush.bf16.msrb.mxu1 %v2560_v45 }
 0x547   :  { %1866 = vmatmul.msk.bf16.vlgmr.msrb.gmra.mxu0 %vm112_vm2, %v834_v26  ;;  %v2833_v26 = vld [vmem:[%s3167_s2] ss:$0 sm:$0xff]  ;;  %s1867_s2 = sld [smem:[#allocation3 + $0x1]] }
 0x548   :  { %967 = vmatpush.bf16.msra.mxu0 %v2514_v25  ;;  %1006 = vmatpush.bf16.msra.mxu3 %v2558_v44  ;;  %v100_v38 = vadd.f32 %v2833_v26, %v2762_v27 }
 0x54a   :  { %v873_v17 = vpop.f32.mrf.mxu2  ;;  %1081 = vmatpush.bf16.msrb.mxu1 %v2593_v60 }
 0x54c   :  { %968 = vmatpush.bf16.msra.mxu0 %v2560_v45  ;;  %1007 = vmatpush.bf16.msra.mxu3 %v2596_v62 }
 0x54e   :  { %1082 = vmatpush.bf16.msrb.mxu1 %v2643_v21 }
 0x550   :  { %969 = vmatpush.bf16.msra.mxu0 %v2593_v60  ;;  %1008 = vmatpush.bf16.msra.mxu3 %v2612_v5 }
 0x552   :  { %v875_v18 = vpop.f32.mrf.mxu2 }
 0x553   :  { %v921_v18 = vstv %s1867_s2 }
 0x554   :  { %970 = vmatpush.bf16.msra.mxu0 %v2643_v21  ;;  %1009 = vmatpush.bf16.msra.mxu3 %v2649_v23 }
 0x558   :  { %1021 = vmatpush.bf16.msrb.mxu0 %v2704_v54 }
 0x55c   :  { %1022 = vmatpush.bf16.msrb.mxu0 %v2711_v48 }
 0x5ae   :  { %v860_v19 = vpop.f32.mrf.mxu1 }
 0x5b4   :  { %v847_v56 = vpop.f32.mrf.mxu0  ;;  %v899_v22 = vpop.f32.mrf.mxu2 }
 0x5b5   :  { %v848_v7 = vadd.f32 %v847_v56, %v2771_v51 }
 0x5b6   :  { %v862_v36 = vpop.f32.mrf.mxu1 }
 0x5b7   :  { %v861_v20 = vadd.f32 %v860_v19, %v848_v7 }
 0x5b9   :  { %v874_v39 = vadd.f32 %v873_v17, %v861_v20  ;;  %v809_v17 = vstv %s808_s1 }
 0x5ba   :  { %v886_v41 = vpop.f32.mrf.mxu3  ;;  %v810_v7 = vmul.f32 %v2781_v57, %v809_v17 }
 0x5bb   :  { %v916_v50 = vadd.f32 %v874_v39, %v100_v38  ;;  %2030 = vtanh.f32 %v874_v39  ;;  %v887_v58 = vadd.f32 %v886_v41, %v2775_v9 }
 0x5bc   :  { %v849_v52 = vpop.f32.mrf.mxu0  ;;  %v901_v55 = vpop.f32.mrf.mxu2 }
 0x5bd   :  { %2032 = vtanh.f32 %v916_v50  ;;  %v900_v8 = vadd.f32 %v899_v22, %v887_v58 }
 0x5c1   :  { %v2031_v59 = vpop.eup %2030 }
 0x5c2   :  { %v888_v0 = vpop.f32.mrf.mxu3  ;;  %935 = vrot.lane.b32.xlu2 %v2031_v59, %s2075_s30  ;;  %932 = vrot.lane.b32.xlu1 %v2031_v59, %s2073_s19 }
 0x5c3   :  { %v2033_v3 = vpop.eup %2032 }
 0x5c4   :  { %v912_v27 = vpop.f32.mrf.mxu0  ;;  %v1991_v10 = vpack.i.bf16 %v2031_v59, %v2033_v3 }
 0x5c5   :  { %v913_v14 = vadd.f32 %v912_v27, %v900_v8 }
 0x5c6   :  { %1992 = vrot.lane.b32.xlu0 %v1991_v10, %s2072_s13 }
 0x5c7   :  { %2034 = vtanh.f32 %v913_v14 }
 0x5cc   :  { %v914_v19 = vpop.f32.mrf.mxu0 }
 0x5cd   :  { %v2035_v56 = vpop.eup %2034 }
 0x5ce   :  { %v922_v36 = vmul.f32 %v2035_v56, %v921_v18  ;;  %v946_v20 = vpack.c.bf16 %v2035_v56, %v2035_v56  ;;  %v103_v56 = vadd.f32 %v2833_v26, %v2764_v28 }
 0x5d0   :  { %1868 = vmatmul.msk.bf16.vlgmr.msrb.gmra.mxu3 %vm112_vm2, %v946_v20  ;;  %v2843_v38 = vadd.f32 %v922_v36, %v810_v7 }
 0x5d1   :  { %1101 = vmatpush.bf16.msrb.mxu3 %v2464_v6 }
 0x5d5   :  { %1102 = vmatpush.bf16.msrb.mxu3 %v2491_v16 }
 0x5d9   :  { %1103 = vmatpush.bf16.msrb.mxu3 %v2536_v35 }
 0x5dd   :  { %1104 = vmatpush.bf16.msrb.mxu3 %v2575_v53 }
 0x5e1   :  { %1105 = vmatpush.bf16.msrb.mxu3 %v2608_v4 }
 0x5e5   :  { %1106 = vmatpush.bf16.msrb.mxu3 %v2631_v15 }
 0x5e9   :  { %1107 = vmatpush.bf16.msrb.mxu3 %v2667_v33 }
 0x5ed   :  { %1108 = vmatpush.bf16.msrb.mxu3 %v2687_v42 }
 0x61c   :  { %v936_v57 = vpop.permute.xlu2 %935 }
 0x634   :  { %v933_v22 = vpop.permute.xlu1 %932 }
 0x635   :  { %v941_v39 = vsel %vm112_vm2, %v933_v22, %v936_v57 }
 0x636   :  { %v942_v41 = vsel %vm114_vm3, %v941_v39, %v936_v57 }
 0x637   :  { %v943_v50 = vsel %vm169_vm4, %v942_v41, %v2031_v59 }
 0x638   :  { %v945_v52 = vpack.c.bf16 %v943_v50, %v943_v50  ;;  %v1993_v55 = vpop.permute.xlu0 %1992 }
 0x639   :  { %v1995_v58 = vunpack.i.h.bf16 %v1993_v55  ;;  %v1994_v0 = vunpack.i.l.bf16 %v1993_v55 }
 0x63a   :  { %971 = vmatmul.bf16.vlgmr.msra.gmra.mxu0 %v945_v52  ;;  %1010 = vmatmul.bf16.vlgmr.msra.gmra.mxu3 %v945_v52 }
 0x63b   :  { %v938_v8 = vsel %vm112_vm2, %v2033_v3, %v1994_v0  ;;  %1062 = vmatpush.bf16.msra.mxu0 %v2450_v1  ;;  %v1033_v0 = vstv %s1870_s16 }
 0x63c   :  { %v939_v33 = vsel %vm114_vm3, %v938_v8, %v1995_v58 }
 0x63d   :  { %v940_v42 = vsel %vm169_vm4, %v939_v33, %v933_v22 }
 0x63e   :  { %v944_v27 = vpack.c.bf16 %v940_v42, %v940_v42 }
 0x63f   :  { %1063 = vmatpush.bf16.msra.mxu0 %v2479_v12 }
 0x640   :  { %958 = vmatmul.bf16.vlgmr.msra.gmra.mxu1 %v944_v27  ;;  %997 = vmatmul.bf16.vlgmr.msrb.gmra.mxu2 %v944_v27 }
 0x641   :  { %1114 = vmatpush.bf16.msrb.mxu2 %v2407_v46 }
 0x643   :  { %1064 = vmatpush.bf16.msra.mxu0 %v2526_v29 }
 0x645   :  { %1115 = vmatpush.bf16.msrb.mxu2 %v2439_v61 }
 0x647   :  { %1065 = vmatpush.bf16.msra.mxu0 %v2563_v49 }
 0x649   :  { %1116 = vmatpush.bf16.msrb.mxu2 %v2477_v11 }
 0x64a   :  { %1869 = vmatmul.msk.bf16.vlgmr.msrb.gmra.mxu0 %vm112_vm2, %v946_v20 }
 0x64b   :  { %1066 = vmatpush.bf16.msra.mxu0 %v2599_v63 }
 0x64d   :  { %1117 = vmatpush.bf16.msrb.mxu2 %v2512_v24 }
 0x64f   :  { %1067 = vmatpush.bf16.msra.mxu0 %v2626_v13 }
 0x651   :  { %1118 = vmatpush.bf16.msrb.mxu2 %v2558_v44 }
 0x653   :  { %v985_v59 = vpop.f32.mrf.mxu3  ;;  %1068 = vmatpush.bf16.msra.mxu0 %v2661_v31 }
 0x655   :  { %1119 = vmatpush.bf16.msrb.mxu2 %v2596_v62 }
 0x657   :  { %1069 = vmatpush.bf16.msra.mxu0 %v2682_v40 }
 0x659   :  { %1120 = vmatpush.bf16.msrb.mxu2 %v2612_v5 }
 0x65b   :  { %1133 = vmatpush.bf16.msrb.mxu0 %v2704_v54  ;;  %v987_v3 = vpop.f32.mrf.mxu3 }
 0x65d   :  { %1121 = vmatpush.bf16.msrb.mxu2 %v2649_v23 }
 0x65f   :  { %1134 = vmatpush.bf16.msrb.mxu0 %v2711_v48 }
 0x6b7   :  { %v972_v10 = vpop.f32.mrf.mxu0 }
 0x6bd   :  { %v959_v14 = vpop.f32.mrf.mxu1  ;;  %v1011_v17 = vpop.f32.mrf.mxu3 }
 0x6be   :  { %v960_v18 = vadd.f32 %v959_v14, %v2771_v51 }
 0x6bf   :  { %v974_v19 = vpop.f32.mrf.mxu0 }
 0x6c0   :  { %v973_v31 = vadd.f32 %v972_v10, %v960_v18 }
 0x6c2   :  { %v986_v40 = vadd.f32 %v985_v59, %v973_v31 }
 0x6c3   :  { %v998_v7 = vpop.f32.mrf.mxu2 }
 0x6c4   :  { %v1028_v36 = vadd.f32 %v986_v40, %v103_v56  ;;  %2036 = vtanh.f32 %v986_v40  ;;  %v999_v20 = vadd.f32 %v998_v7, %v2775_v9 }
 0x6c5   :  { %v961_v57 = vpop.f32.mrf.mxu1  ;;  %v1013_v22 = vpop.f32.mrf.mxu3 }
 0x6c6   :  { %2038 = vtanh.f32 %v1028_v36  ;;  %v1012_v39 = vadd.f32 %v1011_v17, %v999_v20 }
 0x6c7   :  { %v1024_v41 = vpop.f32.mrf.mxu0 }
 0x6c8   :  { %v1025_v50 = vadd.f32 %v1024_v41, %v1012_v39  ;;  %v105_v41 = vadd.f32 %v2833_v26, %v2766_v32 }
 0x6ca   :  { %v2037_v52 = vpop.eup %2036  ;;  %2040 = vtanh.f32 %v1025_v50 }
 0x6cb   :  { %v1000_v55 = vpop.f32.mrf.mxu2  ;;  %1047 = vrot.lane.b32.xlu2 %v2037_v52, %s2075_s30  ;;  %1044 = vrot.lane.b32.xlu1 %v2037_v52, %s2073_s19 }
 0x6cc   :  { %v2039_v28 = vpop.eup %2038 }
 0x6cd   :  { %v1996_v58 = vpack.i.bf16 %v2037_v52, %v2039_v28 }
 0x6cf   :  { %v1026_v8 = vpop.f32.mrf.mxu0  ;;  %1997 = vrot.lane.b32.xlu0 %v1996_v58, %s2072_s13 }
 0x6d0   :  { %v2041_v33 = vpop.eup %2040 }
 0x6d1   :  { %v1058_v42 = vpack.c.bf16 %v2041_v33, %v2041_v33  ;;  %v1034_v27 = vmul.f32 %v2041_v33, %v1033_v0 }
 0x6d3   :  { %1871 = vmatmul.msk.bf16.vlgmr.msra.gmra.mxu2 %vm112_vm2, %v1058_v42  ;;  %1199 = vrot.lane.b32.xlu1 %v2612_v5, %s2075_s30  ;;  %v2889_v59 = vadd.f32 %v1034_v27, %v2843_v38 }
 0x6d4   :  { %1229 = vrot.lane.b32.xlu2 %v2375_v34, %s2075_s30 }
 0x6d7   :  { %1197 = vrot.lane.b32.xlu0 %v2593_v60, %s2075_s30 }
 0x6db   :  { %1193 = vrot.lane.b32.xlu1 %v2643_v21, %s2075_s30 }
 0x6dc   :  { %1195 = vrot.lane.b32.xlu2 %v2649_v23, %s2075_s30 }
 0x6df   :  { %1231 = vrot.lane.b32.xlu0 %v2704_v54, %s2075_s30 }
 0x6e3   :  { %1227 = vrot.lane.b32.xlu1 %v2711_v48, %s2075_s30 }
 0x6e4   :  { %1189 = vrot.lane.b32.xlu2 %v2450_v1, %s2075_s30 }
 0x6e7   :  { %1225 = vrot.lane.b32.xlu0 %v2399_v43, %s2075_s30 }
 0x6eb   :  { %1221 = vrot.lane.b32.xlu1 %v2364_v30, %s2075_s30 }
 0x6ec   :  { %1223 = vrot.lane.b32.xlu2 %v2407_v46, %s2075_s30 }
 0x6ef   :  { %1191 = vrot.lane.b32.xlu0 %v2464_v6, %s2075_s30 }
 0x6f3   :  { %1187 = vrot.lane.b32.xlu1 %v2491_v16, %s2075_s30 }
 0x6f4   :  { %1217 = vrot.lane.b32.xlu2 %v2384_v37, %s2075_s30 }
 0x6f7   :  { %1185 = vrot.lane.b32.xlu0 %v2479_v12, %s2075_s30 }
 0x6fb   :  { %1181 = vrot.lane.b32.xlu1 %v2526_v29, %s2075_s30 }
 0x6fc   :  { %1183 = vrot.lane.b32.xlu2 %v2536_v35, %s2075_s30 }
 0x6ff   :  { %1219 = vrot.lane.b32.xlu0 %v2439_v61, %s2075_s30 }
 0x703   :  { %1215 = vrot.lane.b32.xlu1 %v2477_v11, %s2075_s30 }
 0x704   :  { %1177 = vrot.lane.b32.xlu2 %v2563_v49, %s2075_s30 }
 0x707   :  { %1213 = vrot.lane.b32.xlu0 %v2411_v47, %s2075_s30 }
 0x70b   :  { %1209 = vrot.lane.b32.xlu1 %v2452_v2, %s2075_s30 }
 0x70c   :  { %1211 = vrot.lane.b32.xlu2 %v2512_v24, %s2075_s30 }
 0x70f   :  { %1179 = vrot.lane.b32.xlu0 %v2575_v53, %s2075_s30 }
 0x713   :  { %1175 = vrot.lane.b32.xlu1 %v2608_v4, %s2075_s30 }
 0x714   :  { %1205 = vrot.lane.b32.xlu2 %v2514_v25, %s2075_s30 }
 0x717   :  { %1173 = vrot.lane.b32.xlu0 %v2599_v63, %s2075_s30 }
 0x71c   :  { %1169 = vrot.lane.b32.xlu2 %v2626_v13, %s2075_s30 }
 0x71f   :  { %1207 = vrot.lane.b32.xlu0 %v2558_v44, %s2075_s30 }
 0x725   :  { %v1048_v29 = vpop.permute.xlu2 %1047 }
 0x727   :  { %1171 = vrot.lane.b32.xlu0 %v2631_v15, %s2075_s30 }
 0x72e   :  { %v1230_v56 = vpop.permute.xlu2 %1229 }
 0x72f   :  { %1201 = vrot.lane.b32.xlu0 %v2560_v45, %s2075_s30 }
 0x736   :  { %v1196_v55 = vpop.permute.xlu2 %1195 }
 0x737   :  { %1268 = vrot.lane.b32.xlu0 %v2775_v9, %s2075_s30 }
 0x73d   :  { %v1045_v35 = vpop.permute.xlu1 %1044 }
 0x73e   :  { %v1053_v49 = vsel %vm112_vm2, %v1045_v35, %v1048_v29  ;;  %v1190_v26 = vpop.permute.xlu2 %1189 }
 0x73f   :  { %v1054_v53 = vsel %vm114_vm3, %v1053_v49, %v1048_v29  ;;  %1342 = vrot.lane.b32.xlu0 %v2452_v2, %s2073_s19 }
 0x740   :  { %v1055_v63 = vsel %vm169_vm4, %v1054_v53, %v2037_v52 }
 0x741   :  { %v1057_v4 = vpack.c.bf16 %v1055_v63, %v1055_v63  ;;  %v1998_v13 = vpop.permute.xlu0 %1997 }
 0x742   :  { %v2000_v15 = vunpack.i.h.bf16 %v1998_v13  ;;  %v1999_v38 = vunpack.i.l.bf16 %v1998_v13 }
 0x743   :  { %1083 = vmatmul.bf16.vlgmr.msrb.gmra.mxu1 %v1057_v4  ;;  %1122 = vmatmul.bf16.vlgmr.msrb.gmra.mxu2 %v1057_v4 }
 0x744   :  { %v1050_v3 = vsel %vm112_vm2, %v2039_v28, %v1999_v38 }
 0x745   :  { %v1051_v10 = vsel %vm114_vm3, %v1050_v3, %v2000_v15  ;;  %v1200_v7 = vpop.permute.xlu1 %1199 }
 0x746   :  { %v1052_v14 = vsel %vm169_vm4, %v1051_v10, %v1045_v35  ;;  %v1224_v3 = vpop.permute.xlu2 %1223 }
 0x747   :  { %v1056_v17 = vpack.c.bf16 %v1052_v14, %v1052_v14  ;;  %1340 = vrot.lane.b32.xlu0 %v2558_v44, %s2073_s19 }
 0x749   :  { %1070 = vmatmul.bf16.vlgmr.msra.gmra.mxu0 %v1056_v17  ;;  %1109 = vmatmul.bf16.vlgmr.msrb.gmra.mxu3 %v1056_v17  ;;  %v1198_v40 = vpop.permute.xlu0 %1197  ;;  %v1145_v17 = vstv %s1873_s17 }
 0x74d   :  { %v1194_v58 = vpop.permute.xlu1 %1193 }
 0x74f   :  { %1330 = vrot.lane.b32.xlu0 %v2593_v60, %s2073_s19  ;;  %v1241_v60 = vsel %vm169_vm4, %v1198_v40, %v1200_v7 }
 0x750   :  { %1272 = vmatpush.bf16.msra.mxu1 %v1241_v60 }
 0x751   :  { %v1232_v28 = vpop.permute.xlu0 %1231 }
 0x752   :  { %v1249_v33 = vsel %vm169_vm4, %v1230_v56, %v1232_v28 }
 0x753   :  { %1285 = vmatpush.bf16.msra.mxu0 %v1249_v33 }
 0x755   :  { %v1228_v63 = vpop.permute.xlu1 %1227 }
 0x756   :  { %v1097_v18 = vpop.f32.mrf.mxu2 }
 0x757   :  { %1364 = vrot.lane.b32.xlu0 %v2704_v54, %s2073_s19 }
 0x759   :  { %1872 = vmatmul.msk.bf16.vlgmr.msrb.gmra.mxu0 %vm112_vm2, %v1058_v42  ;;  %v1240_v42 = vsel %vm169_vm4, %v1194_v58, %v1196_v55  ;;  %v1226_v53 = vpop.permute.xlu0 %1225 }
 0x75a   :  { %1273 = vmatpush.bf16.msra.mxu1 %v1240_v42  ;;  %v1248_v13 = vsel %vm169_vm4, %v1226_v53, %v1228_v63 }
 0x75b   :  { %1286 = vmatpush.bf16.msra.mxu0 %v1248_v13 }
 0x75d   :  { %v1222_v14 = vpop.permute.xlu1 %1221 }
 0x75e   :  { %v1099_v19 = vpop.f32.mrf.mxu2 }
 0x75f   :  { %1358 = vrot.lane.b32.xlu0 %v2399_v43, %s2073_s19 }
 0x761   :  { %v1192_v10 = vpop.permute.xlu0 %1191 }
 0x762   :  { %v1239_v19 = vsel %vm169_vm4, %v1190_v26, %v1192_v10 }
 0x763   :  { %1274 = vmatpush.bf16.msra.mxu1 %v1239_v19 }
 0x767   :  { %1324 = vrot.lane.b32.xlu0 %v2464_v6, %s2073_s19 }
 0x769   :  { %v1186_v60 = vpop.permute.xlu0 %1185 }
 0x7c0   :  { %v1084_v31 = vpop.f32.mrf.mxu1 }
 0x7c6   :  { %v1071_v36 = vpop.f32.mrf.mxu0  ;;  %v1123_v20 = vpop.f32.mrf.mxu2 }
 0x7c7   :  { %v1072_v57 = vadd.f32 %v1071_v36, %v2771_v51 }
 0x7c8   :  { %v1086_v22 = vpop.f32.mrf.mxu1 }
 0x7c9   :  { %v1085_v39 = vadd.f32 %v1084_v31, %v1072_v57  ;;  %v1247_v31 = vsel %vm169_vm4, %v1222_v14, %v1224_v3  ;;  %v1188_v57 = vpop.permute.xlu1 %1187 }
 0x7ca   :  { %1287 = vmatpush.bf16.msra.mxu0 %v1247_v31  ;;  %v1238_v22 = vsel %vm169_vm4, %v1186_v60, %v1188_v57 }
 0x7cb   :  { %v1098_v50 = vadd.f32 %v1097_v18, %v1085_v39  ;;  %1275 = vmatpush.bf16.msra.mxu1 %v1238_v22 }
 0x7cc   :  { %v1110_v52 = vpop.f32.mrf.mxu3 }
 0x7cd   :  { %v1140_v6 = vadd.f32 %v1098_v50, %v105_v41  ;;  %2042 = vtanh.f32 %v1098_v50  ;;  %v1111_v27 = vadd.f32 %v1110_v52, %v2775_v9  ;;  %v1220_v41 = vpop.permute.xlu0 %1219 }
 0x7ce   :  { %v1073_v0 = vpop.f32.mrf.mxu0  ;;  %v1125_v8 = vpop.f32.mrf.mxu2 }
 0x7cf   :  { %2044 = vtanh.f32 %v1140_v6  ;;  %v1124_v49 = vadd.f32 %v1123_v20, %v1111_v27  ;;  %v1218_v20 = vpop.permute.xlu2 %1217 }
 0x7d1   :  { %v1182_v50 = vpop.permute.xlu1 %1181 }
 0x7d3   :  { %v2043_v29 = vpop.eup %2042 }
 0x7d4   :  { %v1112_v32 = vpop.f32.mrf.mxu3  ;;  %1149 = vrot.lane.b32.xlu1 %v2043_v29, %s2072_s13 }
 0x7d5   :  { %v2045_v35 = vpop.eup %2044  ;;  %v1214_v6 = vpop.permute.xlu0 %1213 }
 0x7d6   :  { %v1136_v4 = vpop.f32.mrf.mxu0  ;;  %v2982_v15 = vsel %vm112_vm2, %v2045_v35, %v2043_v29 }
 0x7d7   :  { %v1137_v38 = vadd.f32 %v1136_v4, %v1124_v49  ;;  %v1184_v39 = vpop.permute.xlu2 %1183 }
 0x7d8   :  { %v1237_v52 = vsel %vm169_vm4, %v1182_v50, %v1184_v39 }
 0x7d9   :  { %2046 = vtanh.f32 %v1137_v38  ;;  %1276 = vmatpush.bf16.msra.mxu1 %v1237_v52  ;;  %v1216_v28 = vpop.permute.xlu1 %1215 }
 0x7da   :  { %v1245_v58 = vsel %vm169_vm4, %v1214_v6, %v1216_v28 }
 0x7dc   :  { %1152 = vrot.lane.b32.xlu1 %v2043_v29, %s2073_s19 }
 0x7dd   :  { %v1180_v8 = vpop.permute.xlu0 %1179 }
 0x7de   :  { %v1138_v18 = vpop.f32.mrf.mxu0 }
 0x7df   :  { %v2047_v56 = vpop.eup %2046  ;;  %v1178_v55 = vpop.permute.xlu2 %1177 }
 0x7e0   :  { %v2001_v40 = vpack.i.bf16 %v2047_v56, %v2043_v29  ;;  %v1146_v7 = vmul.f32 %v2047_v56, %v1145_v17  ;;  %v1236_v42 = vsel %vm169_vm4, %v1178_v55, %v1180_v8 }
 0x7e1   :  { %v1210_v33 = vpop.permute.xlu1 %1209  ;;  %1277 = vmatpush.bf16.msra.mxu1 %v1236_v42 }
 0x7e2   :  { %2002 = vrot.lane.b32.xlu2 %v2001_v40, %s2075_s30  ;;  %v2989_v36 = vadd.f32 %v1146_v7, %v2889_v59  ;;  %v1246_v59 = vsel %vm169_vm4, %v1218_v20, %v1220_v41 }
 0x7e3   :  { %1288 = vmatpush.bf16.msra.mxu0 %v1246_v59 }
 0x7e4   :  { %1203 = vrot.lane.b32.xlu1 %v2596_v62, %s2075_s30 }
 0x7e5   :  { %v1174_v29 = vpop.permute.xlu0 %1173 }
 0x7e7   :  { %1289 = vmatpush.bf16.msra.mxu0 %v1245_v58  ;;  %v1212_v0 = vpop.permute.xlu2 %1211 }
 0x7e8   :  { %v1244_v27 = vsel %vm169_vm4, %v1210_v33, %v1212_v0 }
 0x7ea   :  { %1266 = vrot.lane.b32.xlu2 %v2771_v51, %s2075_s30 }
 0x7eb   :  { %1290 = vmatpush.bf16.msra.mxu0 %v1244_v27  ;;  %v1300_v27 = vstv %s1874_s18 }
 0x7ec   :  { %1346 = vrot.lane.b32.xlu1 %v2411_v47, %s2073_s19 }
 0x7ed   :  { %v1208_v26 = vpop.permute.xlu0 %1207 }
 0x7ef   :  { %v1206_v32 = vpop.permute.xlu2 %1205 }
 0x7f2   :  { %1348 = vrot.lane.b32.xlu2 %v2477_v11, %s2073_s19 }
 0x7f4   :  { %1344 = vrot.lane.b32.xlu1 %v2512_v24, %s2073_s19 }
 0x7fa   :  { %1338 = vrot.lane.b32.xlu2 %v2514_v25, %s2073_s19 }
 0x7fc   :  { %1334 = vrot.lane.b32.xlu1 %v2560_v45, %s2073_s19 }
 0x802   :  { %1336 = vrot.lane.b32.xlu2 %v2596_v62, %s2073_s19 }
 0x804   :  { %1332 = vrot.lane.b32.xlu1 %v2612_v5, %s2073_s19  ;;  %v1176_v5 = vpop.permute.xlu1 %1175 }
 0x805   :  { %v1235_v35 = vsel %vm169_vm4, %v1174_v29, %v1176_v5 }
 0x806   :  { %1278 = vmatpush.bf16.msra.mxu1 %v1235_v35 }
 0x80a   :  { %1362 = vrot.lane.b32.xlu2 %v2375_v34, %s2073_s19 }
 0x80c   :  { %1326 = vrot.lane.b32.xlu1 %v2643_v21, %s2073_s19  ;;  %v1243_v21 = vsel %vm169_vm4, %v1206_v32, %v1208_v26 }
 0x80d   :  { %1291 = vmatpush.bf16.msra.mxu0 %v1243_v21 }
 0x812   :  { %1328 = vrot.lane.b32.xlu2 %v2649_v23, %s2073_s19  ;;  %v1172_v23 = vpop.permute.xlu0 %1171 }
 0x814   :  { %1360 = vrot.lane.b32.xlu1 %v2711_v48, %s2073_s19 }
 0x81a   :  { %1322 = vrot.lane.b32.xlu2 %v2450_v1, %s2073_s19  ;;  %v1170_v1 = vpop.permute.xlu2 %1169  ;;  %v1202_v10 = vpop.permute.xlu0 %1201 }
 0x81b   :  { %v1234_v49 = vsel %vm169_vm4, %v1170_v1, %v1172_v23 }
 0x81c   :  { %1354 = vrot.lane.b32.xlu1 %v2364_v30, %s2073_s19  ;;  %1279 = vmatpush.bf16.msra.mxu1 %v1234_v49 }
 0x822   :  { %1356 = vrot.lane.b32.xlu2 %v2407_v46, %s2073_s19  ;;  %v1269_v19 = vpop.permute.xlu0 %1268 }
 0x824   :  { %1318 = vrot.lane.b32.xlu1 %v2479_v12, %s2073_s19 }
 0x82a   :  { %1320 = vrot.lane.b32.xlu2 %v2491_v16, %s2073_s19  ;;  %v1343_v50 = vpop.permute.xlu0 %1342 }
 0x82c   :  { %1352 = vrot.lane.b32.xlu1 %v2439_v61, %s2073_s19 }
 0x832   :  { %v1341_v52 = vpop.permute.xlu0 %1340 }
 0x834   :  { %1393 = vrot.lane.b32.xlu1 %v2775_v9, %s2073_s19 }
 0x83a   :  { %v1331_v55 = vpop.permute.xlu0 %1330 }
 0x83c   :  { %1466 = vrot.lane.b32.xlu1 %v2399_v43, %s2072_s13  ;;  %v2003_v16 = vpop.permute.xlu2 %2002 }
 0x83d   :  { %v2004_v38 = vunpack.i.l.bf16 %v2003_v16  ;;  %v2005_v43 = vunpack.i.h.bf16 %v2003_v16 }
 0x842   :  { %v1365_v58 = vpop.permute.xlu0 %1364 }
 0x844   :  { %1464 = vrot.lane.b32.xlu1 %v2407_v46, %s2072_s13  ;;  %v1267_v31 = vpop.permute.xlu2 %1266 }
 0x845   :  { %v1270_v56 = vsel %vm169_vm4, %v1267_v31, %v1269_v19 }
 0x846   :  { %v1150_v12 = vpop.permute.xlu1 %1149 }
 0x847   :  { %v1163_v53 = vsel %vm114_vm3, %v2982_v15, %v1150_v12 }
 0x848   :  { %v1164_v63 = vsel %vm169_vm4, %v1163_v53, %v1150_v12 }
 0x849   :  { %v1167_v4 = vpack.c.bf16 %v1164_v63, %v1164_v63 }
 0x84a   :  { %v1359_v8 = vpop.permute.xlu0 %1358 }
 0x84b   :  { %1280 = vmatmul.bf16.vlgmr.msra.gmra.mxu1 %v1167_v4 }
 0x84c   :  { %1454 = vrot.lane.b32.xlu1 %v2411_v47, %s2072_s13  ;;  %v1349_v57 = vpop.permute.xlu2 %1348 }
 0x84e   :  { %v1153_v13 = vpop.permute.xlu1 %1152 }
 0x84f   :  { %v1165_v3 = vsel %vm114_vm3, %v1153_v13, %v2004_v38 }
 0x850   :  { %v1166_v46 = vsel %vm169_vm4, %v1165_v3, %v2005_v43 }
 0x851   :  { %v1168_v17 = vpack.c.bf16 %v1166_v46, %v1166_v46 }
 0x852   :  { %v1325_v29 = vpop.permute.xlu0 %1324 }
 0x854   :  { %1452 = vrot.lane.b32.xlu1 %v2512_v24, %s2072_s13  ;;  %v1339_v22 = vpop.permute.xlu2 %1338 }
 0x856   :  { %v1204_v15 = vpop.permute.xlu1 %1203 }
 0x857   :  { %v1242_v14 = vsel %vm169_vm4, %v1202_v10, %v1204_v15 }
 0x858   :  { %1292 = vmatpush.bf16.msra.mxu0 %v1242_v14 }
 0x85b   :  { %1293 = vmatmul.bf16.vlgmr.msra.gmra.mxu0 %v1168_v17 }
 0x85e   :  { %v1347_v39 = vpop.permute.xlu1 %1346 }
 0x85f   :  { %v1374_v41 = vsel %vm114_vm3, %v1347_v39, %v1349_v57 }
 0x860   :  { %1400 = vmatpush.bf16.msra.mxu3 %v1374_v41 }
 0x866   :  { %v1345_v59 = vpop.permute.xlu1 %1344 }
 0x8c8   :  { %v1281_v18 = vpop.f32.mrf.mxu1 }
 0x8c9   :  { %v1282_v40 = vadd.f32 %v1281_v18, %v1270_v56 }
 0x8d0   :  { %v1283_v47 = vpop.f32.mrf.mxu1 }
 0x8d8   :  { %v1294_v7 = vpop.f32.mrf.mxu0 }
 0x8d9   :  { %v1295_v20 = vadd.f32 %v1294_v7, %v1282_v40 }
 0x8db   :  { %2048 = vtanh.f32 %v1295_v20 }
 0x8e0   :  { %v1296_v60 = vpop.f32.mrf.mxu0 }
 0x8e1   :  { %v3055_v24 = vpop.eup %2048 }
 0x8e2   :  { %1311 = vrot.lane.b32.xlu2 %v3055_v24, %s2073_s19  ;;  %1308 = vrot.lane.b32.xlu0 %v3055_v24, %s2072_s13 }
 0x8ea   :  { %1350 = vrot.lane.b32.xlu0 %v2384_v37, %s2073_s19  ;;  %1470 = vrot.lane.b32.xlu2 %v2375_v34, %s2072_s13  ;;  %v1337_v34 = vpop.permute.xlu2 %1336 }
 0x8f2   :  { %1391 = vrot.lane.b32.xlu0 %v2771_v51, %s2073_s19  ;;  %1468 = vrot.lane.b32.xlu2 %v2711_v48, %s2072_s13  ;;  %v1373_v48 = vsel %vm114_vm3, %v1343_v50, %v1345_v59  ;;  %v1363_v6 = vpop.permute.xlu2 %1362 }
 0x8f3   :  { %1401 = vmatpush.bf16.msra.mxu3 %v1373_v48 }
 0x8fa   :  { %1472 = vrot.lane.b32.xlu0 %v2704_v54, %s2072_s13  ;;  %1458 = vrot.lane.b32.xlu2 %v2384_v37, %s2072_s13  ;;  %v1372_v54 = vsel %vm114_vm3, %v1339_v22, %v1341_v52  ;;  %v1335_v37 = vpop.permute.xlu1 %1334 }
 0x8fb   :  { %1402 = vmatpush.bf16.msra.mxu3 %v1372_v54  ;;  %v1428_v54 = vstv %s1876_s20 }
 0x902   :  { %1462 = vrot.lane.b32.xlu0 %v2364_v30, %s2072_s13  ;;  %1456 = vrot.lane.b32.xlu2 %v2477_v11, %s2072_s13  ;;  %v1371_v30 = vsel %vm114_vm3, %v1335_v37, %v1337_v34  ;;  %v1333_v11 = vpop.permute.xlu1 %1332 }
 0x903   :  { %1403 = vmatpush.bf16.msra.mxu3 %v1371_v30  ;;  %v1370_v28 = vsel %vm114_vm3, %v1331_v55, %v1333_v11 }
 0x907   :  { %1404 = vmatpush.bf16.msra.mxu3 %v1370_v28 }
 0x90a   :  { %1460 = vrot.lane.b32.xlu0 %v2439_v61, %s2072_s13  ;;  %1446 = vrot.lane.b32.xlu2 %v2514_v25, %s2072_s13  ;;  %v1378_v61 = vsel %vm114_vm3, %v1363_v6, %v1365_v58  ;;  %v1329_v25 = vpop.permute.xlu2 %1328  ;;  %v1327_v0 = vpop.permute.xlu1 %1326 }
 0x90b   :  { %1417 = vmatpush.bf16.msra.mxu2 %v1378_v61  ;;  %v1892_v61 = vld [vmem:[%s3168_s3 + $0x114] sm:$0xf] }
 0x912   :  { %1450 = vrot.lane.b32.xlu0 %v2452_v2, %s2072_s13  ;;  %1442 = vrot.lane.b32.xlu2 %v2560_v45, %s2072_s13  ;;  %v1369_v2 = vsel %vm114_vm3, %v1327_v0, %v1329_v25  ;;  %v1323_v45 = vpop.permute.xlu2 %1322  ;;  %v1361_v33 = vpop.permute.xlu1 %1360  ;;  %v1965_v25 = vld [vmem:[%s3168_s3 + $0x118] sm:$0xf0] }
 0x913   :  { %1405 = vmatpush.bf16.msra.mxu3 %v1369_v2  ;;  %v1377_v42 = vsel %vm114_vm3, %v1359_v8, %v1361_v33  ;;  %v1893_v0 = vor.u32 %v1965_v25, %v1892_v61 }
 0x914   :  { %1418 = vmatpush.bf16.msra.mxu2 %v1377_v42  ;;  %v1888_v42 = vld [vmem:[%s3168_s3 + $0x104] sm:$0xf] }
 0x91a   :  { %1448 = vrot.lane.b32.xlu0 %v2558_v44, %s2072_s13  ;;  %1493 = vrot.lane.b32.xlu2 %v2775_v9, %s2072_s13  ;;  %v1368_v44 = vsel %vm114_vm3, %v1323_v45, %v1325_v29  ;;  %v1301_v9 = vmul.f32 %v3055_v24, %v1300_v27  ;;  %v1357_v32 = vpop.permute.xlu2 %1356  ;;  %v1355_v5 = vpop.permute.xlu1 %1354  ;;  %v1964_v27 = vld [vmem:[%s3168_s3 + $0x108] sm:$0xf0] }
 0x91b   :  { %1406 = vmatpush.bf16.msra.mxu3 %v1368_v44  ;;  %v1376_v26 = vsel %vm114_vm3, %v1355_v5, %v1357_v32  ;;  %v1889_v29 = vor.u32 %v1964_v27, %v1888_v42  ;;  %v1884_v44 = vld [vmem:[%s3168_s3 + $0xf4] sm:$0xf]  ;;  %v1880_v5 = vld [vmem:[%s3168_s3 + $0xe4] sm:$0xf] }
 0x91c   :  { %1419 = vmatpush.bf16.msra.mxu2 %v1376_v26  ;;  %v1962_v26 = vld [vmem:[%s3168_s3 + $0xe8] sm:$0xf0] }
 0x922   :  { %1444 = vrot.lane.b32.xlu0 %v2596_v62, %s2072_s13  ;;  %v1319_v35 = vpop.permute.xlu1 %1318  ;;  %v1321_v62 = vpop.permute.xlu2 %1320 }
 0x923   :  { %v1367_v21 = vsel %vm114_vm3, %v1319_v35, %v1321_v62  ;;  %v1881_v35 = vor.u32 %v1962_v26, %v1880_v5 }
 0x924   :  { %1407 = vmatpush.bf16.msra.mxu3 %v1367_v21 }
 0x92a   :  { %1303 = vrot.lane.b32.xlu0 %v1301_v9, %s2072_s13  ;;  %v1353_v53 = vpop.permute.xlu1 %1352  ;;  %v1963_v9 = vld [vmem:[%s3168_s3 + $0xf8] sm:$0xf0] }
 0x92b   :  { %v1885_v32 = vor.u32 %v1963_v9, %v1884_v44 }
 0x932   :  { %v1394_v43 = vpop.permute.xlu1 %1393 }
 0x93a   :  { %v1467_v15 = vpop.permute.xlu1 %1466 }
 0x93c   :  { %v1312_v63 = vpop.permute.xlu2 %1311 }
 0x93d   :  { %v1317_v13 = vpack.c.bf16 %v1312_v63, %v1312_v63 }
 0x942   :  { %v1465_v7 = vpop.permute.xlu1 %1464 }
 0x944   :  { %v1471_v46 = vpop.permute.xlu2 %1470 }
 0x94a   :  { %v1455_v41 = vpop.permute.xlu1 %1454 }
 0x94c   :  { %v1469_v40 = vpop.permute.xlu2 %1468 }
 0x94d   :  { %v1481_v20 = vsel %vm112_vm2, %v1467_v15, %v1469_v40 }
 0x952   :  { %v1453_v48 = vpop.permute.xlu1 %1452 }
 0x954   :  { %v1309_v23 = vpop.permute.xlu0 %1308  ;;  %v1459_v39 = vpop.permute.xlu2 %1458 }
 0x955   :  { %v1314_v1 = vsel %vm114_vm3, %v3055_v24, %v1309_v23 }
 0x956   :  { %v1315_v49 = vsel %vm169_vm4, %v1314_v1, %v1309_v23 }
 0x957   :  { %v1316_v12 = vpack.c.bf16 %v1315_v49, %v1315_v49 }
 0x959   :  { %1408 = vmatmul.bf16.vlgmr.msra.gmra.mxu3 %v1316_v12  ;;  %v1512_v12 = vstv %s1877_s14 }
 0x95c   :  { %v1351_v4 = vpop.permute.xlu0 %1350  ;;  %v1457_v59 = vpop.permute.xlu2 %1456 }
 0x95d   :  { %v1375_v16 = vsel %vm114_vm3, %v1351_v4, %v1353_v53  ;;  %v1478_v52 = vsel %vm112_vm2, %v1455_v41, %v1457_v59 }
 0x95e   :  { %1420 = vmatpush.bf16.msra.mxu2 %v1375_v16 }
 0x961   :  { %1875 = vmatmul.msk.bf16.vlgmr.msra.gmra.mxu2 %vm114_vm3, %v1317_v13  ;;  %v2008_v13 = vld [vmem:[%s3169_s4 + $0x1] ss:$0 sm:$0xff] }
 0x962   :  { %1563 = vmatpush.bf16.msrb.mxu2 %v1893_v0 }
 0x964   :  { %v1392_v38 = vpop.permute.xlu0 %1391  ;;  %v1447_v6 = vpop.permute.xlu2 %1446 }
 0x965   :  { %v1395_v18 = vsel %vm114_vm3, %v1392_v38, %v1394_v43 }
 0x966   :  { %1564 = vmatpush.bf16.msrb.mxu2 %v1889_v29 }
 0x96a   :  { %1565 = vmatpush.bf16.msrb.mxu2 %v1885_v32 }
 0x96c   :  { %v1473_v3 = vpop.permute.xlu0 %1472  ;;  %v1443_v28 = vpop.permute.xlu2 %1442 }
 0x96d   :  { %v1482_v14 = vsel %vm112_vm2, %v1471_v46, %v1473_v3 }
 0x96e   :  { %1497 = vmatpush.bf16.msrb.mxu1 %v1482_v14  ;;  %1566 = vmatpush.bf16.msrb.mxu2 %v1881_v35  ;;  %v1574_v14 = vstv %s1895_s15 }
 0x972   :  { %1498 = vmatpush.bf16.msrb.mxu1 %v1481_v20 }
 0x974   :  { %v1463_v17 = vpop.permute.xlu0 %1462  ;;  %v1494_v62 = vpop.permute.xlu2 %1493 }
 0x975   :  { %v1480_v60 = vsel %vm112_vm2, %v1463_v17, %v1465_v7 }
 0x976   :  { %1499 = vmatpush.bf16.msrb.mxu1 %v1480_v60 }
 0x97c   :  { %v1461_v24 = vpop.permute.xlu0 %1460 }
 0x97d   :  { %v1479_v50 = vsel %vm112_vm2, %v1459_v39, %v1461_v24 }
 0x97e   :  { %1500 = vmatpush.bf16.msrb.mxu1 %v1479_v50 }
 0x982   :  { %1501 = vmatpush.bf16.msrb.mxu1 %v1478_v52 }
 0x984   :  { %v1451_v34 = vpop.permute.xlu0 %1450 }
 0x985   :  { %v1477_v37 = vsel %vm112_vm2, %v1451_v34, %v1453_v48 }
 0x986   :  { %1502 = vmatpush.bf16.msrb.mxu1 %v1477_v37 }
 0x98c   :  { %v1449_v55 = vpop.permute.xlu0 %1448 }
 0x98d   :  { %v1476_v11 = vsel %vm112_vm2, %v1447_v6, %v1449_v55 }
 0x98e   :  { %1503 = vmatpush.bf16.msrb.mxu1 %v1476_v11 }
 0x994   :  { %v1445_v58 = vpop.permute.xlu0 %1444 }
 0x99c   :  { %v1304_v43 = vpop.permute.xlu0 %1303 }
 0x99d   :  { %v1306_v46 = vadd.f32 %v1304_v43, %v2989_v36  ;;  %v1586_v36 = vstv %s3172_s7 }
 0x9dc   :  { %v1409_v10 = vpop.f32.mrf.mxu3 }
 0x9dd   :  { %v1410_v47 = vadd.f32 %v1409_v10, %v1395_v18 }
 0x9e4   :  { %v1411_v19 = vpop.f32.mrf.mxu3  ;;  %v1422_v31 = vpop.f32.mrf.mxu2 }
 0x9e5   :  { %v1423_v56 = vadd.f32 %v1422_v31, %v1410_v47 }
 0x9e7   :  { %2050 = vtanh.f32 %v1423_v56  ;;  %v2009_v56 = vld [vmem:[%s3170_s5] ss:$0 sm:$0xff] }
 0x9ec   :  { %v1424_v57 = vpop.f32.mrf.mxu2 }
 0x9ed   :  { %v2051_v22 = vpop.eup %2050 }
 0x9ee   :  { %1436 = vrot.lane.b32.xlu1 %v2051_v22, %s2072_s13  ;;  %v1429_v30 = vmul.f32 %v2051_v22, %v1428_v54 }
 0x9f6   :  { %1491 = vrot.lane.b32.xlu1 %v2771_v51, %s2072_s13  ;;  %v1475_v51 = vsel %vm112_vm2, %v1443_v28, %v1445_v58 }
 0x9f7   :  { %1504 = vmatpush.bf16.msrb.mxu1 %v1475_v51 }
 0x9fe   :  { %1431 = vrot.lane.b32.xlu1 %v1429_v30, %s2073_s19 }
 0xa60   :  { %v1437_v2 = vpop.permute.xlu1 %1436 }
 0xa61   :  { %v1439_v8 = vsel %vm114_vm3, %v2051_v22, %v1437_v2 }
 0xa62   :  { %v1440_v45 = vsel %vm169_vm4, %v1439_v8, %v1437_v2 }
 0xa63   :  { %v1441_v33 = vpack.c.bf16 %v1440_v45, %v1440_v45 }
 0xa65   :  { %1505 = vmatmul.bf16.vlgmr.msrb.gmra.mxu1 %v1441_v33 }
 0xa68   :  { %v1492_v21 = vpop.permute.xlu1 %1491 }
 0xa69   :  { %v1495_v23 = vsel %vm112_vm2, %v1492_v21, %v1494_v62 }
 0xa70   :  { %v1432_v10 = vpop.permute.xlu1 %1431 }
 0xa71   :  { %v1434_v17 = vadd.f32 %v1432_v10, %v1306_v46 }
 0xae2   :  { %v1506_v1 = vpop.f32.mrf.mxu1 }
 0xae3   :  { %v1507_v49 = vadd.f32 %v1506_v1, %v1495_v23 }
 0xae5   :  { %2052 = vtanh.f32 %v1507_v49 }
 0xaea   :  { %v1508_v53 = vpop.f32.mrf.mxu1 }
 0xaeb   :  { %v2053_v63 = vpop.eup %2052 }
 0xaec   :  { %v1519_v4 = vpack.c.bf16 %v2053_v63, %v2053_v63  ;;  %v1513_v16 = vmul.f32 %v2053_v63, %v1512_v12 }
 0xaee   :  { %1894 = vmatmul.msk.bf16.vlgmr.msrb.gmra.mxu2 %vm114_vm3, %v1519_v4  ;;  %1515 = vrot.lane.b32.xlu2 %v1513_v16, %s2075_s30 }
 0xb48   :  { %v1516_v15 = vpop.permute.xlu2 %1515 }
 0xb49   :  { %v1518_v19 = vadd.f32 %v1516_v15, %v1434_v17 }
 0xb71   :  { %v1568_v38 = vpop.f32.mrf.mxu2 }
 0xb72   :  { %v1569_v3 = vadd.f32 %v2008_v13, %v1568_v38 }
 0xb74   :  { %2054 = vtanh.f32 %v1569_v3 }
 0xb79   :  { %v1570_v18 = vpop.f32.mrf.mxu2 }
 0xb7a   :  { %v2055_v47 = vpop.eup %2054 }
 0xb7b   :  { %v1575_v31 = vmul.f32 %v2055_v47, %v1574_v14 }
 0xb7d   :  { %v1576_v40 = vadd.f32 %v1575_v31, %v1518_v19 }
 0xb7f   :  { %v1581_v7 = vmul.f32 %v2009_v56, %v1576_v40 }
 0xb81   :  { %v1582_v20 = vsel %vm112_vm2, %v1581_v7, 0.0 }
 0xb82   :  { %1583 = vadd.xlane.f32.xlu0 %v1582_v20 }
 0xbf5   :  { %v1584_v60 = vpop.xlane.xlu0 %1583 }
 0xbf6   :  { %v1587_v24 = vadd.f32 %v1586_v36, %v1584_v60 }
 0xbf8   :  { %1589 = vst.msk [vmem:[%s3173_s8] sm:$0xff] %vm1588_vm5, %v1587_v24 }
 0xbf9   :  { %1594 = vsyncpa [#allocation4], 1 }

</bundles_post_ra>
